<compile_context>
chip_gen: v7x
topology: tpu7x:2x2x1
jax: 0.10.0
libtpu: 0.0.40
codegen_flags: <defaults>
</compile_context>

<pallas_src>
import jax
import jax.numpy as jnp
from jax.experimental import pallas as pl
from jax.experimental.pallas import tpu as pltpu


def _smooth_l1(pred, target):
    # torch.nn.SmoothL1Loss(reduction='none'), beta = 1.0
    d = jnp.abs(pred - target)
    return jnp.where(d < 1.0, 0.5 * d * d, d - 0.5)


def _round_up(x, m):
    return ((x + m - 1) // m) * m


def _make_kernel(N, J, offs):
    (OFF_AU, OFF_AV, OFF_RU, OFF_RV, OFF_PX, OFF_PY, OFF_PZ,
     OFF_DEPTH, OFF_GX, OFF_GY, OFF_GZ, OFF_FU, OFF_CF,
     OFF_VT, OFF_CROP, OFF_CC) = offs
    NJ = N * J

    def kernel(params_ref, slab_ref, out_ref):
        # params_ref: (6,) f32 in SMEM -> fx, fy, u0, v0, reg_factor, conf_factor
        fx = params_ref[0]
        fy = params_ref[1]
        u0 = params_ref[2]
        v0 = params_ref[3]
        reg_factor = params_ref[4]
        conf_factor = params_ref[5]

        tb = slab_ref.shape[1]
        # Inner lane-chunk size: keeps the vreg working set bounded even when
        # the grid-level lane tile is large (review item on vreg spills).
        if tb % 256 == 0:
            cb = 256
        elif tb % 128 == 0:
            cb = 128
        else:
            cb = tb

        for c0 in range(0, tb, cb):
            def row(k, n=1, c0=c0):
                return slab_ref[k:k + n, c0:c0 + cb]     # (n, cb)

            gx = row(OFF_GX, J)                          # (J, cb)
            gy = row(OFF_GY, J)
            gz = row(OFF_GZ, J)

            # ---- loop-invariant sublane broadcasts, hoisted out of the N loop ----
            def brow(k):
                return jnp.broadcast_to(row(k), (J, cb))

            c00 = brow(OFF_CROP + 0)
            c01 = brow(OFF_CROP + 1)
            c02 = brow(OFF_CROP + 2)
            c10 = brow(OFF_CROP + 3)
            c11 = brow(OFF_CROP + 4)
            c12 = brow(OFF_CROP + 5)
            com_z = brow(OFF_CC + 0)
            # EUP approximate reciprocal (padded lanes hold 1.0 -> stays finite).
            inv_half_cube = jnp.broadcast_to(
                pl.reciprocal(row(OFF_CC + 1) * 0.5, approx=True), (J, cb))

            # Deferred reductions: accumulate (J, cb), sum over sublanes once.
            anchor_acc = jnp.zeros((J, cb), jnp.float32)
            reg_acc = jnp.zeros((J, cb), jnp.float32)
            depth_acc = jnp.zeros((J, cb), jnp.float32)
            err_rows = []

            # N is tiny and static -> fully unrolled.
            for n in range(N):
                base = OFF_VT + 16 * n

                def t(i, j, base=base):
                    return row(base + 4 * i + j)         # (1, cb)

                # transform_3D: homogeneous view transform of GT joints
                xt = t(0, 0) * gx + t(0, 1) * gy + t(0, 2) * gz + t(0, 3)
                yt = t(1, 0) * gx + t(1, 1) * gy + t(1, 2) * gz + t(1, 3)
                zt = t(2, 0) * gx + t(2, 1) * gy + t(2, 2) * gz + t(2, 3)

                # transform_3D_to_2D: pinhole projection (exact divide — approx
                # reciprocal shifts u,v by ~0.3px, too close to test tolerance)
                inv_z = 1.0 / zt
                u = xt * inv_z * fx + u0
                v = yt * inv_z * fy + v0

                # transform_2D: affine crop transform
                uc = c00 * u + c01 * v + c02
                vc = c10 * u + c11 * v + c12

                depth_gt = (zt - com_z) * inv_half_cube

                anchor_acc = anchor_acc \
                    + _smooth_l1(row(OFF_AU + n * J, J), uc) \
                    + _smooth_l1(row(OFF_AV + n * J, J), vc)
                reg_acc = reg_acc \
                    + _smooth_l1(row(OFF_RU + n * J, J), uc) \
                    + _smooth_l1(row(OFF_RV + n * J, J), vc)
                depth_acc = depth_acc \
                    + _smooth_l1(row(OFF_DEPTH + n * J, J), depth_gt)

                # per-view 3D error
                dx = row(OFF_PX + n * J, J) - gx
                dy = row(OFF_PY + n * J, J) - gy
                dz = row(OFF_PZ + n * J, J) - gz
                d3 = jnp.sqrt(dx * dx + dy * dy + dz * dz)
                err_rows.append(jnp.sum(d3, axis=0, keepdims=True) * (1.0 / J))

            anchor_loss = jnp.sum(anchor_acc, axis=0, keepdims=True) * (1.0 / (2 * NJ))
            regression_loss = jnp.sum(reg_acc, axis=0, keepdims=True) * (1.0 / (2 * NJ))
            depth_loss = jnp.sum(depth_acc, axis=0, keepdims=True) * (1.0 / NJ)

            conf_all = row(OFF_CF, 3 * J)
            gt_all = row(OFF_GX, 3 * J)
            conf_loss = jnp.sum(_smooth_l1(conf_all, gt_all),
                                axis=0, keepdims=True) * (1.0 / (3 * J))

            reg_loss = regression_loss * 0.5 + depth_loss
            loss = anchor_loss + reg_loss * reg_factor + conf_loss * conf_factor

            fdx = row(OFF_FU, J) - gx
            fdy = row(OFF_FU + J, J) - gy
            fdz = row(OFF_FU + 2 * J, J) - gz
            err_fused = jnp.sum(jnp.sqrt(fdx * fdx + fdy * fdy + fdz * fdz),
                                axis=0, keepdims=True) * (1.0 / J)

            cdx = row(OFF_CF, J) - gx
            cdy = row(OFF_CF + J, J) - gy
            cdz = row(OFF_CF + 2 * J, J) - gz
            err_conf = jnp.sum(jnp.sqrt(cdx * cdx + cdy * cdy + cdz * cdz),
                               axis=0, keepdims=True) * (1.0 / J)

            center_err = err_rows[N // 2]
            min_err = err_rows[0]
            mean_err = err_rows[0]
            for n in range(1, N):
                min_err = jnp.minimum(min_err, err_rows[n])
                mean_err = mean_err + err_rows[n]
            mean_err = mean_err * (1.0 / N)

            # Direct lane-dense per-row stores (no sublane concat/packing).
            out_ref[0:1, c0:c0 + cb] = anchor_loss
            out_ref[1:2, c0:c0 + cb] = reg_loss
            out_ref[2:3, c0:c0 + cb] = conf_loss
            out_ref[3:4, c0:c0 + cb] = loss
            out_ref[4:5, c0:c0 + cb] = center_err
            out_ref[5:6, c0:c0 + cb] = min_err
            out_ref[6:7, c0:c0 + cb] = mean_err
            out_ref[7:8, c0:c0 + cb] = err_fused
            out_ref[8:9, c0:c0 + cb] = err_conf
            for n in range(N):
                out_ref[9 + n:10 + n, c0:c0 + cb] = err_rows[n]

    return kernel


def multi_a2j_calculator(anchor_joints_2d_crop, regression_joints_2d_crop,
                         depth_value_norm, joints_3d_pred, joints_3d_fused,
                         joint_3d_conf, view_trans, crop_trans, com_2d, cube,
                         fx, fy, u0, v0, joints_3d_gt,
                         reg_factor=3.0, conf_factor=1.0):
    B, N, J, _ = anchor_joints_2d_crop.shape
    NJ = N * J
    f32 = jnp.float32
    LANE = 128

    # ---- consolidated slab construction: group -> one concat -> one pad -> one transpose ----
    # group 1: per-view per-joint channels [au, av, ru, rv, px, py, pz]  -> (B, 7*NJ)
    g1 = jnp.concatenate([anchor_joints_2d_crop.astype(f32),
                          regression_joints_2d_crop.astype(f32),
                          joints_3d_pred.astype(f32)], axis=-1)          # (B,N,J,7)
    g1 = jnp.transpose(g1, (0, 3, 1, 2)).reshape(B, 7 * NJ)
    # group 2: depth values, natural layout (n*J + j)                    -> (B, NJ)
    g2 = depth_value_norm.astype(f32).reshape(B, NJ)
    # group 3: per-joint channels [gx,gy,gz, fux,fuy,fuz, cfx,cfy,cfz]   -> (B, 9*J)
    g3 = jnp.concatenate([joints_3d_gt.astype(f32),
                          joints_3d_fused.astype(f32),
                          joint_3d_conf.astype(f32)], axis=-1)           # (B,J,9)
    g3 = jnp.transpose(g3, (0, 2, 1)).reshape(B, 9 * J)
    # group 4/5/6: view transforms, crop transforms, (com_z, cube_z)
    g4 = view_trans.astype(f32).reshape(B, 16 * N)
    g5 = crop_trans.astype(f32).reshape(B, 9)
    g6 = jnp.stack([com_2d[:, 2], cube[:, 2]], axis=1).astype(f32)       # (B, 2)

    # row offsets inside the slab
    OFF_AU, OFF_AV, OFF_RU, OFF_RV = 0, NJ, 2 * NJ, 3 * NJ
    OFF_PX, OFF_PY, OFF_PZ = 4 * NJ, 5 * NJ, 6 * NJ
    OFF_DEPTH = 7 * NJ
    OFF_GX = 8 * NJ
    OFF_GY = OFF_GX + J
    OFF_GZ = OFF_GX + 2 * J
    OFF_FU = OFF_GX + 3 * J
    OFF_CF = OFF_GX + 6 * J
    OFF_VT = OFF_GX + 9 * J
    OFF_CROP = OFF_VT + 16 * N
    OFF_CC = OFF_CROP + 9
    ROWS = OFF_CC + 2
    rows_pad = _round_up(ROWS, 8)

    # ---- lane (batch) tile selection ----
    if B <= LANE:
        TB = B
        b_pad = B
    else:
        b128 = _round_up(B, LANE)
        TB = min(512, b128)
        # keep >=2 grid steps when possible so v7x can use both TensorCores
        if b128 // TB < 2:
            TB = max(LANE, _round_up(pl.cdiv(b128, 2), LANE))
        b_pad = _round_up(b128, TB)

    slab = jnp.concatenate([g1, g2, g3, g4, g5, g6], axis=1)             # (B, ROWS)
    # one pad for both batch (lanes) and rows; pad value 1.0 keeps padded lanes finite
    slab = jnp.pad(slab, ((0, b_pad - B), (0, rows_pad - ROWS)),
                   constant_values=1.0)
    slab = jnp.transpose(slab)                                           # (rows_pad, b_pad)

    params = jnp.array([fx, fy, u0, v0, reg_factor, conf_factor], dtype=f32)

    out_rows = 9 + N
    kernel = _make_kernel(
        N, J,
        (OFF_AU, OFF_AV, OFF_RU, OFF_RV, OFF_PX, OFF_PY, OFF_PZ,
         OFF_DEPTH, OFF_GX, OFF_GY, OFF_GZ, OFF_FU, OFF_CF,
         OFF_VT, OFF_CROP, OFF_CC))

    # NOTE: slab tile is rows_pad*TB*4 bytes (double buffered); at TB<=512 this is
    # well under the default scoped-VMEM limit on all generations.  If TB is ever
    # raised past ~4096, pass pltpu.CompilerParams(vmem_limit_bytes=...) (v5e).
    out = pl.pallas_call(
        kernel,
        grid=(b_pad // TB,),
        in_specs=[
            pl.BlockSpec(memory_space=pltpu.MemorySpace.SMEM),           # scalar params
            pl.BlockSpec((rows_pad, TB), lambda b: (0, b)),              # fused slab
        ],
        out_specs=pl.BlockSpec((out_rows, TB), lambda b: (0, b)),
        out_shape=jax.ShapeDtypeStruct((out_rows, b_pad), f32),
        compiler_params=pltpu.CompilerParams(dimension_semantics=("parallel",)),
    )(params, slab)

    out = out[:, :B]
    anchor_loss = out[0]
    reg_loss = out[1]
    conf_loss = out[2]
    loss = out[3]
    center_error_3d = out[4]
    min_error_3d = out[5]
    mean_error_3d = out[6]
    error_3d_fused = out[7]
    error_3d_conf = out[8]
    error_3d = jnp.transpose(out[9:9 + N])        # (B, N)
    return (anchor_loss, reg_loss, conf_loss, loss, center_error_3d,
            min_error_3d, mean_error_3d, error_3d, error_3d_fused, error_3d_conf)


def reference(anchor, regression, depth_value_norm, joints_3d_pred, joints_3d_fused,
              joint_3d_conf, view_trans, crop_trans, com_2d, cube,
              fx, fy, u0, v0, joints_3d_gt, reg_factor, conf_factor):
    """Pure-JAX reference mirroring the torch forward (same helper conventions)."""
    B, N, J, _ = anchor.shape
    gt_e = jnp.broadcast_to(joints_3d_gt[:, None], (B, N, J, 3))
    gt_h = jnp.concatenate([gt_e, jnp.ones((B, N, J, 1))], axis=-1)
    gt_t = jnp.einsum('bnij,bnkj->bnki', view_trans, gt_h)[..., :3]
    u = gt_t[..., 0] / gt_t[..., 2] * fx + u0
    v = gt_t[..., 1] / gt_t[..., 2] * fy + v0
    uv1 = jnp.stack([u, v, jnp.ones_like(u)], axis=-1)
    crop_e = jnp.broadcast_to(crop_trans[:, None], (B, N, 3, 3))
    uv_c = jnp.einsum('bnij,bnkj->bnki', crop_e, uv1)[..., :2]
    com_z = com_2d[:, None, None, 2]
    cube_z = cube[:, None, None, 2]
    depth_gt = (gt_t[..., 2] - com_z) / (cube_z / 2.0)

    anchor_loss = _smooth_l1(anchor, uv_c).reshape(B, -1).mean(-1)
    regression_loss = _smooth_l1(regression, uv_c).reshape(B, -1).mean(-1)
    depth_loss = _smooth_l1(depth_value_norm, depth_gt).reshape(B, -1).mean(-1)
    conf_loss = _smooth_l1(joint_3d_conf, joints_3d_gt).reshape(B, -1).mean(-1)
    reg_loss = regression_loss * 0.5 + depth_loss
    loss = anchor_loss + reg_loss * reg_factor + conf_loss * conf_factor

    error_3d = jnp.linalg.norm(joints_3d_pred - joints_3d_gt[:, None], axis=-1).mean(-1)
    error_3d_fused = jnp.linalg.norm(joints_3d_fused - joints_3d_gt, axis=-1).mean(-1)
    error_3d_conf = jnp.linalg.norm(joint_3d_conf - joints_3d_gt, axis=-1).mean(-1)
    center_error_3d = error_3d[:, N // 2]
    min_error_3d = error_3d.min(-1)
    mean_error_3d = error_3d.mean(-1)
    return (anchor_loss, reg_loss, conf_loss, loss, center_error_3d,
            min_error_3d, mean_error_3d, error_3d, error_3d_fused, error_3d_conf)


def _make_inputs(key, B, N, J):
    ks = jax.random.split(key, 12)
    joints_3d_gt = jnp.concatenate([
        jax.random.uniform(ks[0], (B, J, 2), minval=-60.0, maxval=60.0),
        jax.random.uniform(ks[1], (B, J, 1), minval=450.0, maxval=550.0)], axis=-1)

    view_trans = jnp.tile(jnp.eye(4)[None, None], (B, N, 1, 1))
    trans_noise = jax.random.uniform(ks[2], (B, N, 3, 1), minval=-10.0, maxval=10.0)
    view_trans = view_trans.at[:, :, :3, 3:4].add(trans_noise)

    crop_trans = jnp.tile(jnp.array([[0.6, 0.0, -30.0],
                                     [0.0, 0.6, -20.0],
                                     [0.0, 0.0, 1.0]])[None], (B, 1, 1))
    crop_trans = crop_trans.at[:, :2, :].add(0.02 * jax.random.normal(ks[3], (B, 2, 3)))

    com_2d = jnp.concatenate([
        jax.random.uniform(ks[4], (B, 2), minval=100.0, maxval=200.0),
        jax.random.uniform(ks[5], (B, 1), minval=480.0, maxval=520.0)], axis=-1)
    cube = jnp.full((B, 3), 250.0, dtype=jnp.float32)

    anchor = jax.random.uniform(ks[6], (B, N, J, 2), minval=0.0, maxval=176.0)
    regression = jax.random.uniform(ks[7], (B, N, J, 2), minval=0.0, maxval=176.0)
    depth_value_norm = jax.random.uniform(ks[8], (B, N, J), minval=-1.0, maxval=1.0)
    joints_3d_pred = joints_3d_gt[:, None] + 5.0 * jax.random.normal(ks[9], (B, N, J, 3))
    joints_3d_fused = joints_3d_gt + 3.0 * jax.random.normal(ks[10], (B, J, 3))
    joint_3d_conf = joints_3d_gt + 3.0 * jax.random.normal(ks[11], (B, J, 3))
    return (anchor, regression, depth_value_norm, joints_3d_pred, joints_3d_fused,
            joint_3d_conf, view_trans, crop_trans, com_2d, cube, joints_3d_gt)


def _run_case(key, B, N, J, reg_factor, conf_factor, fx, fy, u0, v0):
    (anchor, regression, depth_value_norm, joints_3d_pred, joints_3d_fused,
     joint_3d_conf, view_trans, crop_trans, com_2d, cube,
     joints_3d_gt) = _make_inputs(key, B, N, J)

    outs = multi_a2j_calculator(
        anchor, regression, depth_value_norm, joints_3d_pred, joints_3d_fused,
        joint_3d_conf, view_trans, crop_trans, com_2d, cube, fx, fy, u0, v0,
        joints_3d_gt, reg_factor=reg_factor, conf_factor=conf_factor)
    outs = jax.block_until_ready(outs)

    refs = reference(
        anchor, regression, depth_value_norm, joints_3d_pred, joints_3d_fused,
        joint_3d_conf, view_trans, crop_trans, com_2d, cube, fx, fy, u0, v0,
        joints_3d_gt, reg_factor, conf_factor)

    names = ["anchor_loss", "reg_loss", "conf_loss", "loss", "center_error_3d",
             "min_error_3d", "mean_error_3d", "error_3d", "error_3d_fused",
             "error_3d_conf"]
    for name, o, r in zip(names, outs, refs):
        assert o.shape == r.shape, (name, o.shape, r.shape)
        assert jnp.allclose(o, r, rtol=2e-3, atol=1e-2), (name, o, r)


if __name__ == "__main__":
    reg_factor, conf_factor = 3.0, 1.0
    fx = fy = 588.0
    u0, v0 = 320.0, 240.0
    N, J = 3, 8

    # Small case (single grid step, lanes = B).
    _run_case(jax.random.PRNGKey(0), 2, N, J, reg_factor, conf_factor, fx, fy, u0, v0)
    # Batched case (TB=128, grid of 2, exercises lane padding of the last tile).
    _run_case(jax.random.PRNGKey(1), 192, N, J, reg_factor, conf_factor, fx, fy, u0, v0)
    # Larger case (TB=384, grid of 2, exercises the inner lane-chunk loop + padding).
    _run_case(jax.random.PRNGKey(2), 600, N, J, reg_factor, conf_factor, fx, fy, u0, v0)

    print("KERNEL_OK")
</pallas_src>

<mosaic_0001>
module attributes {stable_mosaic.version = 11 : i64} {
  func.func @kernel(%arg0: i32, %arg1: memref<6xf32, #tpu.memory_space<smem>>, %arg2: memref<328x2xf32, #tpu.memory_space<vmem>>, %arg3: memref<12x2xf32, #tpu.memory_space<vmem>>) attributes {dimension_semantics = [#tpu.dimension_semantics<parallel>], iteration_bounds = array<i64: 1>, scalar_prefetch = 0 : i64, scratch_operands = 0 : i64, tpu.core_type = #tpu.core_type<tc>, window_params = [{transform_indices = @transform_0, window_bounds = array<i64: 6>}, {transform_indices = @transform_1, window_bounds = array<i64: 328, 2>}, {transform_indices = @transform_2, window_bounds = array<i64: 12, 2>}]} {
    %c0 = arith.constant 0 : index
    %0 = memref.load %arg1[%c0] : memref<6xf32, #tpu.memory_space<smem>>
    %c1 = arith.constant 1 : index
    %1 = memref.load %arg1[%c1] : memref<6xf32, #tpu.memory_space<smem>>
    %c2 = arith.constant 2 : index
    %2 = memref.load %arg1[%c2] : memref<6xf32, #tpu.memory_space<smem>>
    %c3 = arith.constant 3 : index
    %3 = memref.load %arg1[%c3] : memref<6xf32, #tpu.memory_space<smem>>
    %c4 = arith.constant 4 : index
    %4 = memref.load %arg1[%c4] : memref<6xf32, #tpu.memory_space<smem>>
    %c5 = arith.constant 5 : index
    %5 = memref.load %arg1[%c5] : memref<6xf32, #tpu.memory_space<smem>>
    %c192 = arith.constant 192 : index
    %c0_0 = arith.constant 0 : index
    %6 = vector.load %arg2[%c192, %c0_0] : memref<328x2xf32, #tpu.memory_space<vmem>>, vector<8x2xf32>
    %c200 = arith.constant 200 : index
    %c0_1 = arith.constant 0 : index
    %7 = vector.load %arg2[%c200, %c0_1] : memref<328x2xf32, #tpu.memory_space<vmem>>, vector<8x2xf32>
    %c208 = arith.constant 208 : index
    %c0_2 = arith.constant 0 : index
    %8 = vector.load %arg2[%c208, %c0_2] : memref<328x2xf32, #tpu.memory_space<vmem>>, vector<8x2xf32>
    %c312 = arith.constant 312 : index
    %c0_3 = arith.constant 0 : index
    %9 = vector.load %arg2[%c312, %c0_3] : memref<328x2xf32, #tpu.memory_space<vmem>>, vector<1x2xf32>
    %10 = vector.shape_cast %9 : vector<1x2xf32> to vector<1x2xf32>
    %11 = vector.broadcast %10 : vector<1x2xf32> to vector<8x2xf32>
    %c313 = arith.constant 313 : index
    %c0_4 = arith.constant 0 : index
    %12 = vector.load %arg2[%c313, %c0_4] : memref<328x2xf32, #tpu.memory_space<vmem>>, vector<1x2xf32>
    %13 = vector.shape_cast %12 : vector<1x2xf32> to vector<1x2xf32>
    %14 = vector.broadcast %13 : vector<1x2xf32> to vector<8x2xf32>
    %c314 = arith.constant 314 : index
    %c0_5 = arith.constant 0 : index
    %15 = vector.load %arg2[%c314, %c0_5] : memref<328x2xf32, #tpu.memory_space<vmem>>, vector<1x2xf32>
    %16 = vector.shape_cast %15 : vector<1x2xf32> to vector<1x2xf32>
    %17 = vector.broadcast %16 : vector<1x2xf32> to vector<8x2xf32>
    %c315 = arith.constant 315 : index
    %c0_6 = arith.constant 0 : index
    %18 = vector.load %arg2[%c315, %c0_6] : memref<328x2xf32, #tpu.memory_space<vmem>>, vector<1x2xf32>
    %19 = vector.shape_cast %18 : vector<1x2xf32> to vector<1x2xf32>
    %20 = vector.broadcast %19 : vector<1x2xf32> to vector<8x2xf32>
    %c316 = arith.constant 316 : index
    %c0_7 = arith.constant 0 : index
    %21 = vector.load %arg2[%c316, %c0_7] : memref<328x2xf32, #tpu.memory_space<vmem>>, vector<1x2xf32>
    %22 = vector.shape_cast %21 : vector<1x2xf32> to vector<1x2xf32>
    %23 = vector.broadcast %22 : vector<1x2xf32> to vector<8x2xf32>
    %c317 = arith.constant 317 : index
    %c0_8 = arith.constant 0 : index
    %24 = vector.load %arg2[%c317, %c0_8] : memref<328x2xf32, #tpu.memory_space<vmem>>, vector<1x2xf32>
    %25 = vector.shape_cast %24 : vector<1x2xf32> to vector<1x2xf32>
    %26 = vector.broadcast %25 : vector<1x2xf32> to vector<8x2xf32>
    %c321 = arith.constant 321 : index
    %c0_9 = arith.constant 0 : index
    %27 = vector.load %arg2[%c321, %c0_9] : memref<328x2xf32, #tpu.memory_space<vmem>>, vector<1x2xf32>
    %28 = vector.shape_cast %27 : vector<1x2xf32> to vector<1x2xf32>
    %29 = vector.broadcast %28 : vector<1x2xf32> to vector<8x2xf32>
    %c322 = arith.constant 322 : index
    %c0_10 = arith.constant 0 : index
    %30 = vector.load %arg2[%c322, %c0_10] : memref<328x2xf32, #tpu.memory_space<vmem>>, vector<1x2xf32>
    %cst = arith.constant 5.000000e-01 : f32
    %31 = vector.broadcast %cst : f32 to vector<1x2xf32>
    %32 = arith.mulf %30, %31 : vector<1x2xf32>
    %33 = tpu.reciprocal %32 {approx = true} : vector<1x2xf32> -> vector<1x2xf32>
    %34 = vector.shape_cast %33 : vector<1x2xf32> to vector<1x2xf32>
    %35 = vector.broadcast %34 : vector<1x2xf32> to vector<8x2xf32>
    %cst_11 = arith.constant 0.000000e+00 : f32
    %36 = vector.broadcast %cst_11 : f32 to vector<8x2xf32>
    %cst_12 = arith.constant 0.000000e+00 : f32
    %37 = vector.broadcast %cst_12 : f32 to vector<8x2xf32>
    %cst_13 = arith.constant 0.000000e+00 : f32
    %38 = vector.broadcast %cst_13 : f32 to vector<8x2xf32>
    %c264 = arith.constant 264 : index
    %c0_14 = arith.constant 0 : index
    %39 = vector.load %arg2[%c264, %c0_14] : memref<328x2xf32, #tpu.memory_space<vmem>>, vector<1x2xf32>
    %40 = vector.broadcast %39 : vector<1x2xf32> to vector<8x2xf32>
    %41 = arith.mulf %40, %6 : vector<8x2xf32>
    %c265 = arith.constant 265 : index
    %c0_15 = arith.constant 0 : index
    %42 = vector.load %arg2[%c265, %c0_15] : memref<328x2xf32, #tpu.memory_space<vmem>>, vector<1x2xf32>
    %43 = vector.broadcast %42 : vector<1x2xf32> to vector<8x2xf32>
    %44 = arith.mulf %43, %7 : vector<8x2xf32>
    %45 = arith.addf %41, %44 : vector<8x2xf32>
    %c266 = arith.constant 266 : index
    %c0_16 = arith.constant 0 : index
    %46 = vector.load %arg2[%c266, %c0_16] : memref<328x2xf32, #tpu.memory_space<vmem>>, vector<1x2xf32>
    %47 = vector.broadcast %46 : vector<1x2xf32> to vector<8x2xf32>
    %48 = arith.mulf %47, %8 : vector<8x2xf32>
    %49 = arith.addf %45, %48 : vector<8x2xf32>
    %c267 = arith.constant 267 : index
    %c0_17 = arith.constant 0 : index
    %50 = vector.load %arg2[%c267, %c0_17] : memref<328x2xf32, #tpu.memory_space<vmem>>, vector<1x2xf32>
    %51 = vector.broadcast %50 : vector<1x2xf32> to vector<8x2xf32>
    %52 = arith.addf %49, %51 : vector<8x2xf32>
    %c268 = arith.constant 268 : index
    %c0_18 = arith.constant 0 : index
    %53 = vector.load %arg2[%c268, %c0_18] : memref<328x2xf32, #tpu.memory_space<vmem>>, vector<1x2xf32>
    %54 = vector.broadcast %53 : vector<1x2xf32> to vector<8x2xf32>
    %55 = arith.mulf %54, %6 : vector<8x2xf32>
    %c269 = arith.constant 269 : index
    %c0_19 = arith.constant 0 : index
    %56 = vector.load %arg2[%c269, %c0_19] : memref<328x2xf32, #tpu.memory_space<vmem>>, vector<1x2xf32>
    %57 = vector.broadcast %56 : vector<1x2xf32> to vector<8x2xf32>
    %58 = arith.mulf %57, %7 : vector<8x2xf32>
    %59 = arith.addf %55, %58 : vector<8x2xf32>
    %c270 = arith.constant 270 : index
    %c0_20 = arith.constant 0 : index
    %60 = vector.load %arg2[%c270, %c0_20] : memref<328x2xf32, #tpu.memory_space<vmem>>, vector<1x2xf32>
    %61 = vector.broadcast %60 : vector<1x2xf32> to vector<8x2xf32>
    %62 = arith.mulf %61, %8 : vector<8x2xf32>
    %63 = arith.addf %59, %62 : vector<8x2xf32>
    %c271 = arith.constant 271 : index
    %c0_21 = arith.constant 0 : index
    %64 = vector.load %arg2[%c271, %c0_21] : memref<328x2xf32, #tpu.memory_space<vmem>>, vector<1x2xf32>
    %65 = vector.broadcast %64 : vector<1x2xf32> to vector<8x2xf32>
    %66 = arith.addf %63, %65 : vector<8x2xf32>
    %c272 = arith.constant 272 : index
    %c0_22 = arith.constant 0 : index
    %67 = vector.load %arg2[%c272, %c0_22] : memref<328x2xf32, #tpu.memory_space<vmem>>, vector<1x2xf32>
    %68 = vector.broadcast %67 : vector<1x2xf32> to vector<8x2xf32>
    %69 = arith.mulf %68, %6 : vector<8x2xf32>
    %c273 = arith.constant 273 : index
    %c0_23 = arith.constant 0 : index
    %70 = vector.load %arg2[%c273, %c0_23] : memref<328x2xf32, #tpu.memory_space<vmem>>, vector<1x2xf32>
    %71 = vector.broadcast %70 : vector<1x2xf32> to vector<8x2xf32>
    %72 = arith.mulf %71, %7 : vector<8x2xf32>
    %73 = arith.addf %69, %72 : vector<8x2xf32>
    %c274 = arith.constant 274 : index
    %c0_24 = arith.constant 0 : index
    %74 = vector.load %arg2[%c274, %c0_24] : memref<328x2xf32, #tpu.memory_space<vmem>>, vector<1x2xf32>
    %75 = vector.broadcast %74 : vector<1x2xf32> to vector<8x2xf32>
    %76 = arith.mulf %75, %8 : vector<8x2xf32>
    %77 = arith.addf %73, %76 : vector<8x2xf32>
    %c275 = arith.constant 275 : index
    %c0_25 = arith.constant 0 : index
    %78 = vector.load %arg2[%c275, %c0_25] : memref<328x2xf32, #tpu.memory_space<vmem>>, vector<1x2xf32>
    %79 = vector.broadcast %78 : vector<1x2xf32> to vector<8x2xf32>
    %80 = arith.addf %77, %79 : vector<8x2xf32>
    %cst_26 = arith.constant 1.000000e+00 : f32
    %81 = vector.broadcast %cst_26 : f32 to vector<8x2xf32>
    %82 = arith.divf %81, %80 : vector<8x2xf32>
    %83 = arith.mulf %52, %82 : vector<8x2xf32>
    %84 = vector.broadcast %0 : f32 to vector<8x2xf32>
    %85 = arith.mulf %83, %84 : vector<8x2xf32>
    %86 = vector.broadcast %2 : f32 to vector<8x2xf32>
    %87 = arith.addf %85, %86 : vector<8x2xf32>
    %88 = arith.mulf %66, %82 : vector<8x2xf32>
    %89 = vector.broadcast %1 : f32 to vector<8x2xf32>
    %90 = arith.mulf %88, %89 : vector<8x2xf32>
    %91 = vector.broadcast %3 : f32 to vector<8x2xf32>
    %92 = arith.addf %90, %91 : vector<8x2xf32>
    %93 = arith.mulf %11, %87 : vector<8x2xf32>
    %94 = arith.mulf %14, %92 : vector<8x2xf32>
    %95 = arith.addf %93, %94 : vector<8x2xf32>
    %96 = arith.addf %95, %17 : vector<8x2xf32>
    %97 = arith.mulf %20, %87 : vector<8x2xf32>
    %98 = arith.mulf %23, %92 : vector<8x2xf32>
    %99 = arith.addf %97, %98 : vector<8x2xf32>
    %100 = arith.addf %99, %26 : vector<8x2xf32>
    %101 = arith.subf %80, %29 : vector<8x2xf32>
    %102 = arith.mulf %101, %35 : vector<8x2xf32>
    %c0_27 = arith.constant 0 : index
    %c0_28 = arith.constant 0 : index
    %103 = vector.load %arg2[%c0_27, %c0_28] : memref<328x2xf32, #tpu.memory_space<vmem>>, vector<8x2xf32>
    %104 = arith.subf %103, %96 : vector<8x2xf32>
    %105 = math.absf %104 : vector<8x2xf32>
    %cst_29 = arith.constant 1.000000e+00 : f32
    %106 = vector.broadcast %cst_29 : f32 to vector<8x2xf32>
    %107 = arith.cmpf olt, %105, %106 : vector<8x2xf32>
    %cst_30 = arith.constant 5.000000e-01 : f32
    %108 = vector.broadcast %cst_30 : f32 to vector<8x2xf32>
    %109 = arith.mulf %108, %105 : vector<8x2xf32>
    %110 = arith.mulf %109, %105 : vector<8x2xf32>
    %cst_31 = arith.constant 5.000000e-01 : f32
    %111 = vector.broadcast %cst_31 : f32 to vector<8x2xf32>
    %112 = arith.subf %105, %111 : vector<8x2xf32>
    %113 = arith.select %107, %110, %112 : vector<8x2xi1>, vector<8x2xf32>
    %114 = arith.addf %36, %113 : vector<8x2xf32>
    %c24 = arith.constant 24 : index
    %c0_32 = arith.constant 0 : index
    %115 = vector.load %arg2[%c24, %c0_32] : memref<328x2xf32, #tpu.memory_space<vmem>>, vector<8x2xf32>
    %116 = arith.subf %115, %100 : vector<8x2xf32>
    %117 = math.absf %116 : vector<8x2xf32>
    %cst_33 = arith.constant 1.000000e+00 : f32
    %118 = vector.broadcast %cst_33 : f32 to vector<8x2xf32>
    %119 = arith.cmpf olt, %117, %118 : vector<8x2xf32>
    %cst_34 = arith.constant 5.000000e-01 : f32
    %120 = vector.broadcast %cst_34 : f32 to vector<8x2xf32>
    %121 = arith.mulf %120, %117 : vector<8x2xf32>
    %122 = arith.mulf %121, %117 : vector<8x2xf32>
    %cst_35 = arith.constant 5.000000e-01 : f32
    %123 = vector.broadcast %cst_35 : f32 to vector<8x2xf32>
    %124 = arith.subf %117, %123 : vector<8x2xf32>
    %125 = arith.select %119, %122, %124 : vector<8x2xi1>, vector<8x2xf32>
    %126 = arith.addf %114, %125 : vector<8x2xf32>
    %c48 = arith.constant 48 : index
    %c0_36 = arith.constant 0 : index
    %127 = vector.load %arg2[%c48, %c0_36] : memref<328x2xf32, #tpu.memory_space<vmem>>, vector<8x2xf32>
    %128 = arith.subf %127, %96 : vector<8x2xf32>
    %129 = math.absf %128 : vector<8x2xf32>
    %cst_37 = arith.constant 1.000000e+00 : f32
    %130 = vector.broadcast %cst_37 : f32 to vector<8x2xf32>
    %131 = arith.cmpf olt, %129, %130 : vector<8x2xf32>
    %cst_38 = arith.constant 5.000000e-01 : f32
    %132 = vector.broadcast %cst_38 : f32 to vector<8x2xf32>
    %133 = arith.mulf %132, %129 : vector<8x2xf32>
    %134 = arith.mulf %133, %129 : vector<8x2xf32>
    %cst_39 = arith.constant 5.000000e-01 : f32
    %135 = vector.broadcast %cst_39 : f32 to vector<8x2xf32>
    %136 = arith.subf %129, %135 : vector<8x2xf32>
    %137 = arith.select %131, %134, %136 : vector<8x2xi1>, vector<8x2xf32>
    %138 = arith.addf %37, %137 : vector<8x2xf32>
    %c72 = arith.constant 72 : index
    %c0_40 = arith.constant 0 : index
    %139 = vector.load %arg2[%c72, %c0_40] : memref<328x2xf32, #tpu.memory_space<vmem>>, vector<8x2xf32>
    %140 = arith.subf %139, %100 : vector<8x2xf32>
    %141 = math.absf %140 : vector<8x2xf32>
    %cst_41 = arith.constant 1.000000e+00 : f32
    %142 = vector.broadcast %cst_41 : f32 to vector<8x2xf32>
    %143 = arith.cmpf olt, %141, %142 : vector<8x2xf32>
    %cst_42 = arith.constant 5.000000e-01 : f32
    %144 = vector.broadcast %cst_42 : f32 to vector<8x2xf32>
    %145 = arith.mulf %144, %141 : vector<8x2xf32>
    %146 = arith.mulf %145, %141 : vector<8x2xf32>
    %cst_43 = arith.constant 5.000000e-01 : f32
    %147 = vector.broadcast %cst_43 : f32 to vector<8x2xf32>
    %148 = arith.subf %141, %147 : vector<8x2xf32>
    %149 = arith.select %143, %146, %148 : vector<8x2xi1>, vector<8x2xf32>
    %150 = arith.addf %138, %149 : vector<8x2xf32>
    %c168 = arith.constant 168 : index
    %c0_44 = arith.constant 0 : index
    %151 = vector.load %arg2[%c168, %c0_44] : memref<328x2xf32, #tpu.memory_space<vmem>>, vector<8x2xf32>
    %152 = arith.subf %151, %102 : vector<8x2xf32>
    %153 = math.absf %152 : vector<8x2xf32>
    %cst_45 = arith.constant 1.000000e+00 : f32
    %154 = vector.broadcast %cst_45 : f32 to vector<8x2xf32>
    %155 = arith.cmpf olt, %153, %154 : vector<8x2xf32>
    %cst_46 = arith.constant 5.000000e-01 : f32
    %156 = vector.broadcast %cst_46 : f32 to vector<8x2xf32>
    %157 = arith.mulf %156, %153 : vector<8x2xf32>
    %158 = arith.mulf %157, %153 : vector<8x2xf32>
    %cst_47 = arith.constant 5.000000e-01 : f32
    %159 = vector.broadcast %cst_47 : f32 to vector<8x2xf32>
    %160 = arith.subf %153, %159 : vector<8x2xf32>
    %161 = arith.select %155, %158, %160 : vector<8x2xi1>, vector<8x2xf32>
    %162 = arith.addf %38, %161 : vector<8x2xf32>
    %c96 = arith.constant 96 : index
    %c0_48 = arith.constant 0 : index
    %163 = vector.load %arg2[%c96, %c0_48] : memref<328x2xf32, #tpu.memory_space<vmem>>, vector<8x2xf32>
    %164 = arith.subf %163, %6 : vector<8x2xf32>
    %c120 = arith.constant 120 : index
    %c0_49 = arith.constant 0 : index
    %165 = vector.load %arg2[%c120, %c0_49] : memref<328x2xf32, #tpu.memory_space<vmem>>, vector<8x2xf32>
    %166 = arith.subf %165, %7 : vector<8x2xf32>
    %c144 = arith.constant 144 : index
    %c0_50 = arith.constant 0 : index
    %167 = vector.load %arg2[%c144, %c0_50] : memref<328x2xf32, #tpu.memory_space<vmem>>, vector<8x2xf32>
    %168 = arith.subf %167, %8 : vector<8x2xf32>
    %169 = arith.mulf %164, %164 : vector<8x2xf32>
    %170 = arith.mulf %166, %166 : vector<8x2xf32>
    %171 = arith.addf %169, %170 : vector<8x2xf32>
    %172 = arith.mulf %168, %168 : vector<8x2xf32>
    %173 = arith.addf %171, %172 : vector<8x2xf32>
    %174 = math.sqrt %173 : vector<8x2xf32>
    %cst_51 = arith.constant dense<0.000000e+00> : vector<2xf32>
    %175 = vector.multi_reduction <add>, %174, %cst_51 [0] : vector<8x2xf32> to vector<2xf32>
    %176 = vector.shape_cast %175 : vector<2xf32> to vector<1x2xf32>
    %cst_52 = arith.constant 1.250000e-01 : f32
    %177 = vector.broadcast %cst_52 : f32 to vector<1x2xf32>
    %178 = arith.mulf %176, %177 : vector<1x2xf32>
    %c280 = arith.constant 280 : index
    %c0_53 = arith.constant 0 : index
    %179 = vector.load %arg2[%c280, %c0_53] : memref<328x2xf32, #tpu.memory_space<vmem>>, vector<1x2xf32>
    %180 = vector.broadcast %179 : vector<1x2xf32> to vector<8x2xf32>
    %181 = arith.mulf %180, %6 : vector<8x2xf32>
    %c281 = arith.constant 281 : index
    %c0_54 = arith.constant 0 : index
    %182 = vector.load %arg2[%c281, %c0_54] : memref<328x2xf32, #tpu.memory_space<vmem>>, vector<1x2xf32>
    %183 = vector.broadcast %182 : vector<1x2xf32> to vector<8x2xf32>
    %184 = arith.mulf %183, %7 : vector<8x2xf32>
    %185 = arith.addf %181, %184 : vector<8x2xf32>
    %c282 = arith.constant 282 : index
    %c0_55 = arith.constant 0 : index
    %186 = vector.load %arg2[%c282, %c0_55] : memref<328x2xf32, #tpu.memory_space<vmem>>, vector<1x2xf32>
    %187 = vector.broadcast %186 : vector<1x2xf32> to vector<8x2xf32>
    %188 = arith.mulf %187, %8 : vector<8x2xf32>
    %189 = arith.addf %185, %188 : vector<8x2xf32>
    %c283 = arith.constant 283 : index
    %c0_56 = arith.constant 0 : index
    %190 = vector.load %arg2[%c283, %c0_56] : memref<328x2xf32, #tpu.memory_space<vmem>>, vector<1x2xf32>
    %191 = vector.broadcast %190 : vector<1x2xf32> to vector<8x2xf32>
    %192 = arith.addf %189, %191 : vector<8x2xf32>
    %c284 = arith.constant 284 : index
    %c0_57 = arith.constant 0 : index
    %193 = vector.load %arg2[%c284, %c0_57] : memref<328x2xf32, #tpu.memory_space<vmem>>, vector<1x2xf32>
    %194 = vector.broadcast %193 : vector<1x2xf32> to vector<8x2xf32>
    %195 = arith.mulf %194, %6 : vector<8x2xf32>
    %c285 = arith.constant 285 : index
    %c0_58 = arith.constant 0 : index
    %196 = vector.load %arg2[%c285, %c0_58] : memref<328x2xf32, #tpu.memory_space<vmem>>, vector<1x2xf32>
    %197 = vector.broadcast %196 : vector<1x2xf32> to vector<8x2xf32>
    %198 = arith.mulf %197, %7 : vector<8x2xf32>
    %199 = arith.addf %195, %198 : vector<8x2xf32>
    %c286 = arith.constant 286 : index
    %c0_59 = arith.constant 0 : index
    %200 = vector.load %arg2[%c286, %c0_59] : memref<328x2xf32, #tpu.memory_space<vmem>>, vector<1x2xf32>
    %201 = vector.broadcast %200 : vector<1x2xf32> to vector<8x2xf32>
    %202 = arith.mulf %201, %8 : vector<8x2xf32>
    %203 = arith.addf %199, %202 : vector<8x2xf32>
    %c287 = arith.constant 287 : index
    %c0_60 = arith.constant 0 : index
    %204 = vector.load %arg2[%c287, %c0_60] : memref<328x2xf32, #tpu.memory_space<vmem>>, vector<1x2xf32>
    %205 = vector.broadcast %204 : vector<1x2xf32> to vector<8x2xf32>
    %206 = arith.addf %203, %205 : vector<8x2xf32>
    %c288 = arith.constant 288 : index
    %c0_61 = arith.constant 0 : index
    %207 = vector.load %arg2[%c288, %c0_61] : memref<328x2xf32, #tpu.memory_space<vmem>>, vector<1x2xf32>
    %208 = vector.broadcast %207 : vector<1x2xf32> to vector<8x2xf32>
    %209 = arith.mulf %208, %6 : vector<8x2xf32>
    %c289 = arith.constant 289 : index
    %c0_62 = arith.constant 0 : index
    %210 = vector.load %arg2[%c289, %c0_62] : memref<328x2xf32, #tpu.memory_space<vmem>>, vector<1x2xf32>
    %211 = vector.broadcast %210 : vector<1x2xf32> to vector<8x2xf32>
    %212 = arith.mulf %211, %7 : vector<8x2xf32>
    %213 = arith.addf %209, %212 : vector<8x2xf32>
    %c290 = arith.constant 290 : index
    %c0_63 = arith.constant 0 : index
    %214 = vector.load %arg2[%c290, %c0_63] : memref<328x2xf32, #tpu.memory_space<vmem>>, vector<1x2xf32>
    %215 = vector.broadcast %214 : vector<1x2xf32> to vector<8x2xf32>
    %216 = arith.mulf %215, %8 : vector<8x2xf32>
    %217 = arith.addf %213, %216 : vector<8x2xf32>
    %c291 = arith.constant 291 : index
    %c0_64 = arith.constant 0 : index
    %218 = vector.load %arg2[%c291, %c0_64] : memref<328x2xf32, #tpu.memory_space<vmem>>, vector<1x2xf32>
    %219 = vector.broadcast %218 : vector<1x2xf32> to vector<8x2xf32>
    %220 = arith.addf %217, %219 : vector<8x2xf32>
    %cst_65 = arith.constant 1.000000e+00 : f32
    %221 = vector.broadcast %cst_65 : f32 to vector<8x2xf32>
    %222 = arith.divf %221, %220 : vector<8x2xf32>
    %223 = arith.mulf %192, %222 : vector<8x2xf32>
    %224 = vector.broadcast %0 : f32 to vector<8x2xf32>
    %225 = arith.mulf %223, %224 : vector<8x2xf32>
    %226 = vector.broadcast %2 : f32 to vector<8x2xf32>
    %227 = arith.addf %225, %226 : vector<8x2xf32>
    %228 = arith.mulf %206, %222 : vector<8x2xf32>
    %229 = vector.broadcast %1 : f32 to vector<8x2xf32>
    %230 = arith.mulf %228, %229 : vector<8x2xf32>
    %231 = vector.broadcast %3 : f32 to vector<8x2xf32>
    %232 = arith.addf %230, %231 : vector<8x2xf32>
    %233 = arith.mulf %11, %227 : vector<8x2xf32>
    %234 = arith.mulf %14, %232 : vector<8x2xf32>
    %235 = arith.addf %233, %234 : vector<8x2xf32>
    %236 = arith.addf %235, %17 : vector<8x2xf32>
    %237 = arith.mulf %20, %227 : vector<8x2xf32>
    %238 = arith.mulf %23, %232 : vector<8x2xf32>
    %239 = arith.addf %237, %238 : vector<8x2xf32>
    %240 = arith.addf %239, %26 : vector<8x2xf32>
    %241 = arith.subf %220, %29 : vector<8x2xf32>
    %242 = arith.mulf %241, %35 : vector<8x2xf32>
    %c8 = arith.constant 8 : index
    %c0_66 = arith.constant 0 : index
    %243 = vector.load %arg2[%c8, %c0_66] : memref<328x2xf32, #tpu.memory_space<vmem>>, vector<8x2xf32>
    %244 = arith.subf %243, %236 : vector<8x2xf32>
    %245 = math.absf %244 : vector<8x2xf32>
    %cst_67 = arith.constant 1.000000e+00 : f32
    %246 = vector.broadcast %cst_67 : f32 to vector<8x2xf32>
    %247 = arith.cmpf olt, %245, %246 : vector<8x2xf32>
    %cst_68 = arith.constant 5.000000e-01 : f32
    %248 = vector.broadcast %cst_68 : f32 to vector<8x2xf32>
    %249 = arith.mulf %248, %245 : vector<8x2xf32>
    %250 = arith.mulf %249, %245 : vector<8x2xf32>
    %cst_69 = arith.constant 5.000000e-01 : f32
    %251 = vector.broadcast %cst_69 : f32 to vector<8x2xf32>
    %252 = arith.subf %245, %251 : vector<8x2xf32>
    %253 = arith.select %247, %250, %252 : vector<8x2xi1>, vector<8x2xf32>
    %254 = arith.addf %126, %253 : vector<8x2xf32>
    %c32 = arith.constant 32 : index
    %c0_70 = arith.constant 0 : index
    %255 = vector.load %arg2[%c32, %c0_70] : memref<328x2xf32, #tpu.memory_space<vmem>>, vector<8x2xf32>
    %256 = arith.subf %255, %240 : vector<8x2xf32>
    %257 = math.absf %256 : vector<8x2xf32>
    %cst_71 = arith.constant 1.000000e+00 : f32
    %258 = vector.broadcast %cst_71 : f32 to vector<8x2xf32>
    %259 = arith.cmpf olt, %257, %258 : vector<8x2xf32>
    %cst_72 = arith.constant 5.000000e-01 : f32
    %260 = vector.broadcast %cst_72 : f32 to vector<8x2xf32>
    %261 = arith.mulf %260, %257 : vector<8x2xf32>
    %262 = arith.mulf %261, %257 : vector<8x2xf32>
    %cst_73 = arith.constant 5.000000e-01 : f32
    %263 = vector.broadcast %cst_73 : f32 to vector<8x2xf32>
    %264 = arith.subf %257, %263 : vector<8x2xf32>
    %265 = arith.select %259, %262, %264 : vector<8x2xi1>, vector<8x2xf32>
    %266 = arith.addf %254, %265 : vector<8x2xf32>
    %c56 = arith.constant 56 : index
    %c0_74 = arith.constant 0 : index
    %267 = vector.load %arg2[%c56, %c0_74] : memref<328x2xf32, #tpu.memory_space<vmem>>, vector<8x2xf32>
    %268 = arith.subf %267, %236 : vector<8x2xf32>
    %269 = math.absf %268 : vector<8x2xf32>
    %cst_75 = arith.constant 1.000000e+00 : f32
    %270 = vector.broadcast %cst_75 : f32 to vector<8x2xf32>
    %271 = arith.cmpf olt, %269, %270 : vector<8x2xf32>
    %cst_76 = arith.constant 5.000000e-01 : f32
    %272 = vector.broadcast %cst_76 : f32 to vector<8x2xf32>
    %273 = arith.mulf %272, %269 : vector<8x2xf32>
    %274 = arith.mulf %273, %269 : vector<8x2xf32>
    %cst_77 = arith.constant 5.000000e-01 : f32
    %275 = vector.broadcast %cst_77 : f32 to vector<8x2xf32>
    %276 = arith.subf %269, %275 : vector<8x2xf32>
    %277 = arith.select %271, %274, %276 : vector<8x2xi1>, vector<8x2xf32>
    %278 = arith.addf %150, %277 : vector<8x2xf32>
    %c80 = arith.constant 80 : index
    %c0_78 = arith.constant 0 : index
    %279 = vector.load %arg2[%c80, %c0_78] : memref<328x2xf32, #tpu.memory_space<vmem>>, vector<8x2xf32>
    %280 = arith.subf %279, %240 : vector<8x2xf32>
    %281 = math.absf %280 : vector<8x2xf32>
    %cst_79 = arith.constant 1.000000e+00 : f32
    %282 = vector.broadcast %cst_79 : f32 to vector<8x2xf32>
    %283 = arith.cmpf olt, %281, %282 : vector<8x2xf32>
    %cst_80 = arith.constant 5.000000e-01 : f32
    %284 = vector.broadcast %cst_80 : f32 to vector<8x2xf32>
    %285 = arith.mulf %284, %281 : vector<8x2xf32>
    %286 = arith.mulf %285, %281 : vector<8x2xf32>
    %cst_81 = arith.constant 5.000000e-01 : f32
    %287 = vector.broadcast %cst_81 : f32 to vector<8x2xf32>
    %288 = arith.subf %281, %287 : vector<8x2xf32>
    %289 = arith.select %283, %286, %288 : vector<8x2xi1>, vector<8x2xf32>
    %290 = arith.addf %278, %289 : vector<8x2xf32>
    %c176 = arith.constant 176 : index
    %c0_82 = arith.constant 0 : index
    %291 = vector.load %arg2[%c176, %c0_82] : memref<328x2xf32, #tpu.memory_space<vmem>>, vector<8x2xf32>
    %292 = arith.subf %291, %242 : vector<8x2xf32>
    %293 = math.absf %292 : vector<8x2xf32>
    %cst_83 = arith.constant 1.000000e+00 : f32
    %294 = vector.broadcast %cst_83 : f32 to vector<8x2xf32>
    %295 = arith.cmpf olt, %293, %294 : vector<8x2xf32>
    %cst_84 = arith.constant 5.000000e-01 : f32
    %296 = vector.broadcast %cst_84 : f32 to vector<8x2xf32>
    %297 = arith.mulf %296, %293 : vector<8x2xf32>
    %298 = arith.mulf %297, %293 : vector<8x2xf32>
    %cst_85 = arith.constant 5.000000e-01 : f32
    %299 = vector.broadcast %cst_85 : f32 to vector<8x2xf32>
    %300 = arith.subf %293, %299 : vector<8x2xf32>
    %301 = arith.select %295, %298, %300 : vector<8x2xi1>, vector<8x2xf32>
    %302 = arith.addf %162, %301 : vector<8x2xf32>
    %c104 = arith.constant 104 : index
    %c0_86 = arith.constant 0 : index
    %303 = vector.load %arg2[%c104, %c0_86] : memref<328x2xf32, #tpu.memory_space<vmem>>, vector<8x2xf32>
    %304 = arith.subf %303, %6 : vector<8x2xf32>
    %c128 = arith.constant 128 : index
    %c0_87 = arith.constant 0 : index
    %305 = vector.load %arg2[%c128, %c0_87] : memref<328x2xf32, #tpu.memory_space<vmem>>, vector<8x2xf32>
    %306 = arith.subf %305, %7 : vector<8x2xf32>
    %c152 = arith.constant 152 : index
    %c0_88 = arith.constant 0 : index
    %307 = vector.load %arg2[%c152, %c0_88] : memref<328x2xf32, #tpu.memory_space<vmem>>, vector<8x2xf32>
    %308 = arith.subf %307, %8 : vector<8x2xf32>
    %309 = arith.mulf %304, %304 : vector<8x2xf32>
    %310 = arith.mulf %306, %306 : vector<8x2xf32>
    %311 = arith.addf %309, %310 : vector<8x2xf32>
    %312 = arith.mulf %308, %308 : vector<8x2xf32>
    %313 = arith.addf %311, %312 : vector<8x2xf32>
    %314 = math.sqrt %313 : vector<8x2xf32>
    %cst_89 = arith.constant dense<0.000000e+00> : vector<2xf32>
    %315 = vector.multi_reduction <add>, %314, %cst_89 [0] : vector<8x2xf32> to vector<2xf32>
    %316 = vector.shape_cast %315 : vector<2xf32> to vector<1x2xf32>
    %cst_90 = arith.constant 1.250000e-01 : f32
    %317 = vector.broadcast %cst_90 : f32 to vector<1x2xf32>
    %318 = arith.mulf %316, %317 : vector<1x2xf32>
    %c296 = arith.constant 296 : index
    %c0_91 = arith.constant 0 : index
    %319 = vector.load %arg2[%c296, %c0_91] : memref<328x2xf32, #tpu.memory_space<vmem>>, vector<1x2xf32>
    %320 = vector.broadcast %319 : vector<1x2xf32> to vector<8x2xf32>
    %321 = arith.mulf %320, %6 : vector<8x2xf32>
    %c297 = arith.constant 297 : index
    %c0_92 = arith.constant 0 : index
    %322 = vector.load %arg2[%c297, %c0_92] : memref<328x2xf32, #tpu.memory_space<vmem>>, vector<1x2xf32>
    %323 = vector.broadcast %322 : vector<1x2xf32> to vector<8x2xf32>
    %324 = arith.mulf %323, %7 : vector<8x2xf32>
    %325 = arith.addf %321, %324 : vector<8x2xf32>
    %c298 = arith.constant 298 : index
    %c0_93 = arith.constant 0 : index
    %326 = vector.load %arg2[%c298, %c0_93] : memref<328x2xf32, #tpu.memory_space<vmem>>, vector<1x2xf32>
    %327 = vector.broadcast %326 : vector<1x2xf32> to vector<8x2xf32>
    %328 = arith.mulf %327, %8 : vector<8x2xf32>
    %329 = arith.addf %325, %328 : vector<8x2xf32>
    %c299 = arith.constant 299 : index
    %c0_94 = arith.constant 0 : index
    %330 = vector.load %arg2[%c299, %c0_94] : memref<328x2xf32, #tpu.memory_space<vmem>>, vector<1x2xf32>
    %331 = vector.broadcast %330 : vector<1x2xf32> to vector<8x2xf32>
    %332 = arith.addf %329, %331 : vector<8x2xf32>
    %c300 = arith.constant 300 : index
    %c0_95 = arith.constant 0 : index
    %333 = vector.load %arg2[%c300, %c0_95] : memref<328x2xf32, #tpu.memory_space<vmem>>, vector<1x2xf32>
    %334 = vector.broadcast %333 : vector<1x2xf32> to vector<8x2xf32>
    %335 = arith.mulf %334, %6 : vector<8x2xf32>
    %c301 = arith.constant 301 : index
    %c0_96 = arith.constant 0 : index
    %336 = vector.load %arg2[%c301, %c0_96] : memref<328x2xf32, #tpu.memory_space<vmem>>, vector<1x2xf32>
    %337 = vector.broadcast %336 : vector<1x2xf32> to vector<8x2xf32>
    %338 = arith.mulf %337, %7 : vector<8x2xf32>
    %339 = arith.addf %335, %338 : vector<8x2xf32>
    %c302 = arith.constant 302 : index
    %c0_97 = arith.constant 0 : index
    %340 = vector.load %arg2[%c302, %c0_97] : memref<328x2xf32, #tpu.memory_space<vmem>>, vector<1x2xf32>
    %341 = vector.broadcast %340 : vector<1x2xf32> to vector<8x2xf32>
    %342 = arith.mulf %341, %8 : vector<8x2xf32>
    %343 = arith.addf %339, %342 : vector<8x2xf32>
    %c303 = arith.constant 303 : index
    %c0_98 = arith.constant 0 : index
    %344 = vector.load %arg2[%c303, %c0_98] : memref<328x2xf32, #tpu.memory_space<vmem>>, vector<1x2xf32>
    %345 = vector.broadcast %344 : vector<1x2xf32> to vector<8x2xf32>
    %346 = arith.addf %343, %345 : vector<8x2xf32>
    %c304 = arith.constant 304 : index
    %c0_99 = arith.constant 0 : index
    %347 = vector.load %arg2[%c304, %c0_99] : memref<328x2xf32, #tpu.memory_space<vmem>>, vector<1x2xf32>
    %348 = vector.broadcast %347 : vector<1x2xf32> to vector<8x2xf32>
    %349 = arith.mulf %348, %6 : vector<8x2xf32>
    %c305 = arith.constant 305 : index
    %c0_100 = arith.constant 0 : index
    %350 = vector.load %arg2[%c305, %c0_100] : memref<328x2xf32, #tpu.memory_space<vmem>>, vector<1x2xf32>
    %351 = vector.broadcast %350 : vector<1x2xf32> to vector<8x2xf32>
    %352 = arith.mulf %351, %7 : vector<8x2xf32>
    %353 = arith.addf %349, %352 : vector<8x2xf32>
    %c306 = arith.constant 306 : index
    %c0_101 = arith.constant 0 : index
    %354 = vector.load %arg2[%c306, %c0_101] : memref<328x2xf32, #tpu.memory_space<vmem>>, vector<1x2xf32>
    %355 = vector.broadcast %354 : vector<1x2xf32> to vector<8x2xf32>
    %356 = arith.mulf %355, %8 : vector<8x2xf32>
    %357 = arith.addf %353, %356 : vector<8x2xf32>
    %c307 = arith.constant 307 : index
    %c0_102 = arith.constant 0 : index
    %358 = vector.load %arg2[%c307, %c0_102] : memref<328x2xf32, #tpu.memory_space<vmem>>, vector<1x2xf32>
    %359 = vector.broadcast %358 : vector<1x2xf32> to vector<8x2xf32>
    %360 = arith.addf %357, %359 : vector<8x2xf32>
    %cst_103 = arith.constant 1.000000e+00 : f32
    %361 = vector.broadcast %cst_103 : f32 to vector<8x2xf32>
    %362 = arith.divf %361, %360 : vector<8x2xf32>
    %363 = arith.mulf %332, %362 : vector<8x2xf32>
    %364 = vector.broadcast %0 : f32 to vector<8x2xf32>
    %365 = arith.mulf %363, %364 : vector<8x2xf32>
    %366 = vector.broadcast %2 : f32 to vector<8x2xf32>
    %367 = arith.addf %365, %366 : vector<8x2xf32>
    %368 = arith.mulf %346, %362 : vector<8x2xf32>
    %369 = vector.broadcast %1 : f32 to vector<8x2xf32>
    %370 = arith.mulf %368, %369 : vector<8x2xf32>
    %371 = vector.broadcast %3 : f32 to vector<8x2xf32>
    %372 = arith.addf %370, %371 : vector<8x2xf32>
    %373 = arith.mulf %11, %367 : vector<8x2xf32>
    %374 = arith.mulf %14, %372 : vector<8x2xf32>
    %375 = arith.addf %373, %374 : vector<8x2xf32>
    %376 = arith.addf %375, %17 : vector<8x2xf32>
    %377 = arith.mulf %20, %367 : vector<8x2xf32>
    %378 = arith.mulf %23, %372 : vector<8x2xf32>
    %379 = arith.addf %377, %378 : vector<8x2xf32>
    %380 = arith.addf %379, %26 : vector<8x2xf32>
    %381 = arith.subf %360, %29 : vector<8x2xf32>
    %382 = arith.mulf %381, %35 : vector<8x2xf32>
    %c16 = arith.constant 16 : index
    %c0_104 = arith.constant 0 : index
    %383 = vector.load %arg2[%c16, %c0_104] : memref<328x2xf32, #tpu.memory_space<vmem>>, vector<8x2xf32>
    %384 = arith.subf %383, %376 : vector<8x2xf32>
    %385 = math.absf %384 : vector<8x2xf32>
    %cst_105 = arith.constant 1.000000e+00 : f32
    %386 = vector.broadcast %cst_105 : f32 to vector<8x2xf32>
    %387 = arith.cmpf olt, %385, %386 : vector<8x2xf32>
    %cst_106 = arith.constant 5.000000e-01 : f32
    %388 = vector.broadcast %cst_106 : f32 to vector<8x2xf32>
    %389 = arith.mulf %388, %385 : vector<8x2xf32>
    %390 = arith.mulf %389, %385 : vector<8x2xf32>
    %cst_107 = arith.constant 5.000000e-01 : f32
    %391 = vector.broadcast %cst_107 : f32 to vector<8x2xf32>
    %392 = arith.subf %385, %391 : vector<8x2xf32>
    %393 = arith.select %387, %390, %392 : vector<8x2xi1>, vector<8x2xf32>
    %394 = arith.addf %266, %393 : vector<8x2xf32>
    %c40 = arith.constant 40 : index
    %c0_108 = arith.constant 0 : index
    %395 = vector.load %arg2[%c40, %c0_108] : memref<328x2xf32, #tpu.memory_space<vmem>>, vector<8x2xf32>
    %396 = arith.subf %395, %380 : vector<8x2xf32>
    %397 = math.absf %396 : vector<8x2xf32>
    %cst_109 = arith.constant 1.000000e+00 : f32
    %398 = vector.broadcast %cst_109 : f32 to vector<8x2xf32>
    %399 = arith.cmpf olt, %397, %398 : vector<8x2xf32>
    %cst_110 = arith.constant 5.000000e-01 : f32
    %400 = vector.broadcast %cst_110 : f32 to vector<8x2xf32>
    %401 = arith.mulf %400, %397 : vector<8x2xf32>
    %402 = arith.mulf %401, %397 : vector<8x2xf32>
    %cst_111 = arith.constant 5.000000e-01 : f32
    %403 = vector.broadcast %cst_111 : f32 to vector<8x2xf32>
    %404 = arith.subf %397, %403 : vector<8x2xf32>
    %405 = arith.select %399, %402, %404 : vector<8x2xi1>, vector<8x2xf32>
    %406 = arith.addf %394, %405 : vector<8x2xf32>
    %c64 = arith.constant 64 : index
    %c0_112 = arith.constant 0 : index
    %407 = vector.load %arg2[%c64, %c0_112] : memref<328x2xf32, #tpu.memory_space<vmem>>, vector<8x2xf32>
    %408 = arith.subf %407, %376 : vector<8x2xf32>
    %409 = math.absf %408 : vector<8x2xf32>
    %cst_113 = arith.constant 1.000000e+00 : f32
    %410 = vector.broadcast %cst_113 : f32 to vector<8x2xf32>
    %411 = arith.cmpf olt, %409, %410 : vector<8x2xf32>
    %cst_114 = arith.constant 5.000000e-01 : f32
    %412 = vector.broadcast %cst_114 : f32 to vector<8x2xf32>
    %413 = arith.mulf %412, %409 : vector<8x2xf32>
    %414 = arith.mulf %413, %409 : vector<8x2xf32>
    %cst_115 = arith.constant 5.000000e-01 : f32
    %415 = vector.broadcast %cst_115 : f32 to vector<8x2xf32>
    %416 = arith.subf %409, %415 : vector<8x2xf32>
    %417 = arith.select %411, %414, %416 : vector<8x2xi1>, vector<8x2xf32>
    %418 = arith.addf %290, %417 : vector<8x2xf32>
    %c88 = arith.constant 88 : index
    %c0_116 = arith.constant 0 : index
    %419 = vector.load %arg2[%c88, %c0_116] : memref<328x2xf32, #tpu.memory_space<vmem>>, vector<8x2xf32>
    %420 = arith.subf %419, %380 : vector<8x2xf32>
    %421 = math.absf %420 : vector<8x2xf32>
    %cst_117 = arith.constant 1.000000e+00 : f32
    %422 = vector.broadcast %cst_117 : f32 to vector<8x2xf32>
    %423 = arith.cmpf olt, %421, %422 : vector<8x2xf32>
    %cst_118 = arith.constant 5.000000e-01 : f32
    %424 = vector.broadcast %cst_118 : f32 to vector<8x2xf32>
    %425 = arith.mulf %424, %421 : vector<8x2xf32>
    %426 = arith.mulf %425, %421 : vector<8x2xf32>
    %cst_119 = arith.constant 5.000000e-01 : f32
    %427 = vector.broadcast %cst_119 : f32 to vector<8x2xf32>
    %428 = arith.subf %421, %427 : vector<8x2xf32>
    %429 = arith.select %423, %426, %428 : vector<8x2xi1>, vector<8x2xf32>
    %430 = arith.addf %418, %429 : vector<8x2xf32>
    %c184 = arith.constant 184 : index
    %c0_120 = arith.constant 0 : index
    %431 = vector.load %arg2[%c184, %c0_120] : memref<328x2xf32, #tpu.memory_space<vmem>>, vector<8x2xf32>
    %432 = arith.subf %431, %382 : vector<8x2xf32>
    %433 = math.absf %432 : vector<8x2xf32>
    %cst_121 = arith.constant 1.000000e+00 : f32
    %434 = vector.broadcast %cst_121 : f32 to vector<8x2xf32>
    %435 = arith.cmpf olt, %433, %434 : vector<8x2xf32>
    %cst_122 = arith.constant 5.000000e-01 : f32
    %436 = vector.broadcast %cst_122 : f32 to vector<8x2xf32>
    %437 = arith.mulf %436, %433 : vector<8x2xf32>
    %438 = arith.mulf %437, %433 : vector<8x2xf32>
    %cst_123 = arith.constant 5.000000e-01 : f32
    %439 = vector.broadcast %cst_123 : f32 to vector<8x2xf32>
    %440 = arith.subf %433, %439 : vector<8x2xf32>
    %441 = arith.select %435, %438, %440 : vector<8x2xi1>, vector<8x2xf32>
    %442 = arith.addf %302, %441 : vector<8x2xf32>
    %c112 = arith.constant 112 : index
    %c0_124 = arith.constant 0 : index
    %443 = vector.load %arg2[%c112, %c0_124] : memref<328x2xf32, #tpu.memory_space<vmem>>, vector<8x2xf32>
    %444 = arith.subf %443, %6 : vector<8x2xf32>
    %c136 = arith.constant 136 : index
    %c0_125 = arith.constant 0 : index
    %445 = vector.load %arg2[%c136, %c0_125] : memref<328x2xf32, #tpu.memory_space<vmem>>, vector<8x2xf32>
    %446 = arith.subf %445, %7 : vector<8x2xf32>
    %c160 = arith.constant 160 : index
    %c0_126 = arith.constant 0 : index
    %447 = vector.load %arg2[%c160, %c0_126] : memref<328x2xf32, #tpu.memory_space<vmem>>, vector<8x2xf32>
    %448 = arith.subf %447, %8 : vector<8x2xf32>
    %449 = arith.mulf %444, %444 : vector<8x2xf32>
    %450 = arith.mulf %446, %446 : vector<8x2xf32>
    %451 = arith.addf %449, %450 : vector<8x2xf32>
    %452 = arith.mulf %448, %448 : vector<8x2xf32>
    %453 = arith.addf %451, %452 : vector<8x2xf32>
    %454 = math.sqrt %453 : vector<8x2xf32>
    %cst_127 = arith.constant dense<0.000000e+00> : vector<2xf32>
    %455 = vector.multi_reduction <add>, %454, %cst_127 [0] : vector<8x2xf32> to vector<2xf32>
    %456 = vector.shape_cast %455 : vector<2xf32> to vector<1x2xf32>
    %cst_128 = arith.constant 1.250000e-01 : f32
    %457 = vector.broadcast %cst_128 : f32 to vector<1x2xf32>
    %458 = arith.mulf %456, %457 : vector<1x2xf32>
    %cst_129 = arith.constant dense<0.000000e+00> : vector<2xf32>
    %459 = vector.multi_reduction <add>, %406, %cst_129 [0] : vector<8x2xf32> to vector<2xf32>
    %460 = vector.shape_cast %459 : vector<2xf32> to vector<1x2xf32>
    %cst_130 = arith.constant 0.020833334 : f32
    %461 = vector.broadcast %cst_130 : f32 to vector<1x2xf32>
    %462 = arith.mulf %460, %461 : vector<1x2xf32>
    %cst_131 = arith.constant dense<0.000000e+00> : vector<2xf32>
    %463 = vector.multi_reduction <add>, %430, %cst_131 [0] : vector<8x2xf32> to vector<2xf32>
    %464 = vector.shape_cast %463 : vector<2xf32> to vector<1x2xf32>
    %cst_132 = arith.constant 0.020833334 : f32
    %465 = vector.broadcast %cst_132 : f32 to vector<1x2xf32>
    %466 = arith.mulf %464, %465 : vector<1x2xf32>
    %cst_133 = arith.constant dense<0.000000e+00> : vector<2xf32>
    %467 = vector.multi_reduction <add>, %442, %cst_133 [0] : vector<8x2xf32> to vector<2xf32>
    %468 = vector.shape_cast %467 : vector<2xf32> to vector<1x2xf32>
    %cst_134 = arith.constant 0.0416666679 : f32
    %469 = vector.broadcast %cst_134 : f32 to vector<1x2xf32>
    %470 = arith.mulf %468, %469 : vector<1x2xf32>
    %c240 = arith.constant 240 : index
    %c0_135 = arith.constant 0 : index
    %471 = vector.load %arg2[%c240, %c0_135] : memref<328x2xf32, #tpu.memory_space<vmem>>, vector<24x2xf32>
    %c192_136 = arith.constant 192 : index
    %c0_137 = arith.constant 0 : index
    %472 = vector.load %arg2[%c192_136, %c0_137] : memref<328x2xf32, #tpu.memory_space<vmem>>, vector<24x2xf32>
    %473 = arith.subf %471, %472 : vector<24x2xf32>
    %474 = math.absf %473 : vector<24x2xf32>
    %cst_138 = arith.constant 1.000000e+00 : f32
    %475 = vector.broadcast %cst_138 : f32 to vector<24x2xf32>
    %476 = arith.cmpf olt, %474, %475 : vector<24x2xf32>
    %cst_139 = arith.constant 5.000000e-01 : f32
    %477 = vector.broadcast %cst_139 : f32 to vector<24x2xf32>
    %478 = arith.mulf %477, %474 : vector<24x2xf32>
    %479 = arith.mulf %478, %474 : vector<24x2xf32>
    %cst_140 = arith.constant 5.000000e-01 : f32
    %480 = vector.broadcast %cst_140 : f32 to vector<24x2xf32>
    %481 = arith.subf %474, %480 : vector<24x2xf32>
    %482 = arith.select %476, %479, %481 : vector<24x2xi1>, vector<24x2xf32>
    %cst_141 = arith.constant dense<0.000000e+00> : vector<2xf32>
    %483 = vector.multi_reduction <add>, %482, %cst_141 [0] : vector<24x2xf32> to vector<2xf32>
    %484 = vector.shape_cast %483 : vector<2xf32> to vector<1x2xf32>
    %cst_142 = arith.constant 0.0416666679 : f32
    %485 = vector.broadcast %cst_142 : f32 to vector<1x2xf32>
    %486 = arith.mulf %484, %485 : vector<1x2xf32>
    %cst_143 = arith.constant 5.000000e-01 : f32
    %487 = vector.broadcast %cst_143 : f32 to vector<1x2xf32>
    %488 = arith.mulf %466, %487 : vector<1x2xf32>
    %489 = arith.addf %488, %470 : vector<1x2xf32>
    %490 = vector.broadcast %4 : f32 to vector<1x2xf32>
    %491 = arith.mulf %489, %490 : vector<1x2xf32>
    %492 = arith.addf %462, %491 : vector<1x2xf32>
    %493 = vector.broadcast %5 : f32 to vector<1x2xf32>
    %494 = arith.mulf %486, %493 : vector<1x2xf32>
    %495 = arith.addf %492, %494 : vector<1x2xf32>
    %c216 = arith.constant 216 : index
    %c0_144 = arith.constant 0 : index
    %496 = vector.load %arg2[%c216, %c0_144] : memref<328x2xf32, #tpu.memory_space<vmem>>, vector<8x2xf32>
    %497 = arith.subf %496, %6 : vector<8x2xf32>
    %c224 = arith.constant 224 : index
    %c0_145 = arith.constant 0 : index
    %498 = vector.load %arg2[%c224, %c0_145] : memref<328x2xf32, #tpu.memory_space<vmem>>, vector<8x2xf32>
    %499 = arith.subf %498, %7 : vector<8x2xf32>
    %c232 = arith.constant 232 : index
    %c0_146 = arith.constant 0 : index
    %500 = vector.load %arg2[%c232, %c0_146] : memref<328x2xf32, #tpu.memory_space<vmem>>, vector<8x2xf32>
    %501 = arith.subf %500, %8 : vector<8x2xf32>
    %502 = arith.mulf %497, %497 : vector<8x2xf32>
    %503 = arith.mulf %499, %499 : vector<8x2xf32>
    %504 = arith.addf %502, %503 : vector<8x2xf32>
    %505 = arith.mulf %501, %501 : vector<8x2xf32>
    %506 = arith.addf %504, %505 : vector<8x2xf32>
    %507 = math.sqrt %506 : vector<8x2xf32>
    %cst_147 = arith.constant dense<0.000000e+00> : vector<2xf32>
    %508 = vector.multi_reduction <add>, %507, %cst_147 [0] : vector<8x2xf32> to vector<2xf32>
    %509 = vector.shape_cast %508 : vector<2xf32> to vector<1x2xf32>
    %cst_148 = arith.constant 1.250000e-01 : f32
    %510 = vector.broadcast %cst_148 : f32 to vector<1x2xf32>
    %511 = arith.mulf %509, %510 : vector<1x2xf32>
    %c240_149 = arith.constant 240 : index
    %c0_150 = arith.constant 0 : index
    %512 = vector.load %arg2[%c240_149, %c0_150] : memref<328x2xf32, #tpu.memory_space<vmem>>, vector<8x2xf32>
    %513 = arith.subf %512, %6 : vector<8x2xf32>
    %c248 = arith.constant 248 : index
    %c0_151 = arith.constant 0 : index
    %514 = vector.load %arg2[%c248, %c0_151] : memref<328x2xf32, #tpu.memory_space<vmem>>, vector<8x2xf32>
    %515 = arith.subf %514, %7 : vector<8x2xf32>
    %c256 = arith.constant 256 : index
    %c0_152 = arith.constant 0 : index
    %516 = vector.load %arg2[%c256, %c0_152] : memref<328x2xf32, #tpu.memory_space<vmem>>, vector<8x2xf32>
    %517 = arith.subf %516, %8 : vector<8x2xf32>
    %518 = arith.mulf %513, %513 : vector<8x2xf32>
    %519 = arith.mulf %515, %515 : vector<8x2xf32>
    %520 = arith.addf %518, %519 : vector<8x2xf32>
    %521 = arith.mulf %517, %517 : vector<8x2xf32>
    %522 = arith.addf %520, %521 : vector<8x2xf32>
    %523 = math.sqrt %522 : vector<8x2xf32>
    %cst_153 = arith.constant dense<0.000000e+00> : vector<2xf32>
    %524 = vector.multi_reduction <add>, %523, %cst_153 [0] : vector<8x2xf32> to vector<2xf32>
    %525 = vector.shape_cast %524 : vector<2xf32> to vector<1x2xf32>
    %cst_154 = arith.constant 1.250000e-01 : f32
    %526 = vector.broadcast %cst_154 : f32 to vector<1x2xf32>
    %527 = arith.mulf %525, %526 : vector<1x2xf32>
    %528 = arith.minimumf %178, %318 : vector<1x2xf32>
    %529 = arith.addf %178, %318 : vector<1x2xf32>
    %530 = arith.minimumf %528, %458 : vector<1x2xf32>
    %531 = arith.addf %529, %458 : vector<1x2xf32>
    %cst_155 = arith.constant 0.333333343 : f32
    %532 = vector.broadcast %cst_155 : f32 to vector<1x2xf32>
    %533 = arith.mulf %531, %532 : vector<1x2xf32>
    %c0_156 = arith.constant 0 : index
    %c0_157 = arith.constant 0 : index
    %534 = vector.load %arg3[%c0_156, %c0_157] : memref<12x2xf32, #tpu.memory_space<vmem>>, vector<1x2xf32>
    tpu.vector_store %arg3[%c0_156, %c0_157], %462 {strides = array<i32>} : memref<12x2xf32, #tpu.memory_space<vmem>>, vector<1x2xf32>,
    %c1_158 = arith.constant 1 : index
    %c0_159 = arith.constant 0 : index
    %535 = vector.load %arg3[%c1_158, %c0_159] : memref<12x2xf32, #tpu.memory_space<vmem>>, vector<1x2xf32>
    tpu.vector_store %arg3[%c1_158, %c0_159], %489 {strides = array<i32>} : memref<12x2xf32, #tpu.memory_space<vmem>>, vector<1x2xf32>,
    %c2_160 = arith.constant 2 : index
    %c0_161 = arith.constant 0 : index
    %536 = vector.load %arg3[%c2_160, %c0_161] : memref<12x2xf32, #tpu.memory_space<vmem>>, vector<1x2xf32>
    tpu.vector_store %arg3[%c2_160, %c0_161], %486 {strides = array<i32>} : memref<12x2xf32, #tpu.memory_space<vmem>>, vector<1x2xf32>,
    %c3_162 = arith.constant 3 : index
    %c0_163 = arith.constant 0 : index
    %537 = vector.load %arg3[%c3_162, %c0_163] : memref<12x2xf32, #tpu.memory_space<vmem>>, vector<1x2xf32>
    tpu.vector_store %arg3[%c3_162, %c0_163], %495 {strides = array<i32>} : memref<12x2xf32, #tpu.memory_space<vmem>>, vector<1x2xf32>,
    %c4_164 = arith.constant 4 : index
    %c0_165 = arith.constant 0 : index
    %538 = vector.load %arg3[%c4_164, %c0_165] : memref<12x2xf32, #tpu.memory_space<vmem>>, vector<1x2xf32>
    tpu.vector_store %arg3[%c4_164, %c0_165], %318 {strides = array<i32>} : memref<12x2xf32, #tpu.memory_space<vmem>>, vector<1x2xf32>,
    %c5_166 = arith.constant 5 : index
    %c0_167 = arith.constant 0 : index
    %539 = vector.load %arg3[%c5_166, %c0_167] : memref<12x2xf32, #tpu.memory_space<vmem>>, vector<1x2xf32>
    tpu.vector_store %arg3[%c5_166, %c0_167], %530 {strides = array<i32>} : memref<12x2xf32, #tpu.memory_space<vmem>>, vector<1x2xf32>,
    %c6 = arith.constant 6 : index
    %c0_168 = arith.constant 0 : index
    %540 = vector.load %arg3[%c6, %c0_168] : memref<12x2xf32, #tpu.memory_space<vmem>>, vector<1x2xf32>
    tpu.vector_store %arg3[%c6, %c0_168], %533 {strides = array<i32>} : memref<12x2xf32, #tpu.memory_space<vmem>>, vector<1x2xf32>,
    %c7 = arith.constant 7 : index
    %c0_169 = arith.constant 0 : index
    %541 = vector.load %arg3[%c7, %c0_169] : memref<12x2xf32, #tpu.memory_space<vmem>>, vector<1x2xf32>
    tpu.vector_store %arg3[%c7, %c0_169], %511 {strides = array<i32>} : memref<12x2xf32, #tpu.memory_space<vmem>>, vector<1x2xf32>,
    %c8_170 = arith.constant 8 : index
    %c0_171 = arith.constant 0 : index
    %542 = vector.load %arg3[%c8_170, %c0_171] : memref<12x2xf32, #tpu.memory_space<vmem>>, vector<1x2xf32>
    tpu.vector_store %arg3[%c8_170, %c0_171], %527 {strides = array<i32>} : memref<12x2xf32, #tpu.memory_space<vmem>>, vector<1x2xf32>,
    %c9 = arith.constant 9 : index
    %c0_172 = arith.constant 0 : index
    %543 = vector.load %arg3[%c9, %c0_172] : memref<12x2xf32, #tpu.memory_space<vmem>>, vector<1x2xf32>
    tpu.vector_store %arg3[%c9, %c0_172], %178 {strides = array<i32>} : memref<12x2xf32, #tpu.memory_space<vmem>>, vector<1x2xf32>,
    %c10 = arith.constant 10 : index
    %c0_173 = arith.constant 0 : index
    %544 = vector.load %arg3[%c10, %c0_173] : memref<12x2xf32, #tpu.memory_space<vmem>>, vector<1x2xf32>
    tpu.vector_store %arg3[%c10, %c0_173], %318 {strides = array<i32>} : memref<12x2xf32, #tpu.memory_space<vmem>>, vector<1x2xf32>,
    %c11 = arith.constant 11 : index
    %c0_174 = arith.constant 0 : index
    %545 = vector.load %arg3[%c11, %c0_174] : memref<12x2xf32, #tpu.memory_space<vmem>>, vector<1x2xf32>
    tpu.vector_store %arg3[%c11, %c0_174], %458 {strides = array<i32>} : memref<12x2xf32, #tpu.memory_space<vmem>>, vector<1x2xf32>,
    return
  }
  func.func @transform_0(%arg0: i32) -> i32 {
    %c0_i32 = arith.constant 0 : i32
    %c0_i32_0 = arith.constant 0 : i32
    return %c0_i32 : i32
  }
  func.func @transform_1(%arg0: i32) -> (i32, i32) {
    %c0_i32 = arith.constant 0 : i32
    %c0_i32_0 = arith.constant 0 : i32
    return %c0_i32, %arg0 : i32, i32
  }
  func.func @transform_2(%arg0: i32) -> (i32, i32) {
    %c0_i32 = arith.constant 0 : i32
    %c0_i32_0 = arith.constant 0 : i32
    return %c0_i32, %arg0 : i32, i32
  }
}

</mosaic_0001>

<bundles_post_ra>
// kernel: tpu_custom_call.1
= control target key start
LH: loop header
LB: loop body
LE: loop exit
PB: predicated region body
PF: predicated region fallthrough
CT: control target
= control target key end

     0   :  { %7 = vsyncpa [#allocation3], 0  ;;  %s1370_s0 = inlined_call_operand.vmem [shape: f32[6], index: 0, kind: input, shape index: {}]   ;;  %s1371_s1 = inlined_call_operand.vmem [shape: f32[328,2], index: 1, kind: input, shape index: {}]   ;;  %s1372_s2 = inlined_call_operand.vmem [shape: f32[12,2], index: 2, kind: output, shape index: {}]  }
   0x1   :  { %s14_s11 = sshll.u32 %s1370_s0, 4  ;;  %s15_s11 = int_to_ptr.vmem [resolvable:$true] %s14_s11 }
   0x2   :  { %s803_s12 = scalar_lea.vmem %s15_s11, 16  ;;  %p808_p1 = scmp.lt.s32.totalorder %s15_s11, %s15_s11 }
   0x3   :  { %p804_p0 = scmp.ne.s32.totalorder %s15_s11, %s803_s12  ;;  %p809_p2 = scmp.lt.s32.totalorder %s803_s12, %s803_s12 }
   0x5   :  { %p810_p3 = por %p809_p2, %p808_p1 }
   0x7   :  { %p811_p4 = pnand %p810_p3, %p804_p0 }
   0x9   :  { %814 = shalt.err (!%p811_p4)
}
   0xa   :  { %s817_s13 = smov [#allocation2]  }
   0xb   :  { %17 = dma.vmem_to_smem %s15_s11, 16, %s817_s13, [#allocation3]  }
   0xc   :  { %815 = dma.done.wait [#allocation3], 16  }
   0xd   :  { %816 = vsyncadd [#allocation3], 4294967280 }
   0xe   :  { %23 = sfence }
   0xf   :  { %s24_s14 = sld [smem:[#allocation2]]  ;;  %s836_s15 = sld [smem:[#allocation2 + $0x2]]  ;;  %v843_v0 = vld [vmem:[%s1371_s1 + $0xc0] sm:$0xff]  ;;  %v848_v1 = vld [vmem:[%s1371_s1 + $0xc8] sm:$0xff]  ;;  %v862_v5 = vld [vmem:[%s1371_s1 + $0xd0] sm:$0xff]  ;;  %v71_v27 = vlaneseq  ;;  %vm238_vm0 = vcmask 15360  }
  0x10   :  { %s838_s16 = sld [smem:[#allocation2 + $0x1]]  ;;  %v730_v2 = vld [vmem:[%s1371_s1 + $0x108] ss:$0 sm:$0xff]  ;;  %v731_v3 = vld [vmem:[%s1371_s1 + $0x109] ss:$0 sm:$0xff]  ;;  %s872_s4 = sld [smem:[#allocation2 + $0x3]] }
  0x11   :  { %v732_v4 = vld [vmem:[%s1371_s1 + $0x10a] ss:$0 sm:$0xff]  ;;  %v80_v6 = vmul.f32 %v730_v2, %v843_v0  ;;  %v86_v7 = vmul.f32 %v731_v3, %v848_v1  ;;  %v734_v8 = vld [vmem:[%s1371_s1 + $0x10c] ss:$0 sm:$0xff]  ;;  %v735_v9 = vld [vmem:[%s1371_s1 + $0x10d] ss:$0 sm:$0xff] }
  0x12   :  { %v106_v10 = vmul.f32 %v734_v8, %v843_v0  ;;  %v112_v11 = vmul.f32 %v735_v9, %v848_v1  ;;  %v736_v12 = vld [vmem:[%s1371_s1 + $0x10e] ss:$0 sm:$0xff]  ;;  %v738_v13 = vld [vmem:[%s1371_s1 + $0x110] ss:$0 sm:$0xff]  ;;  %v93_v15 = vmul.f32 %v732_v4, %v862_v5  ;;  %v739_v17 = vld [vmem:[%s1371_s1 + $0x111] ss:$0 sm:$0xff] }
  0x13   :  { %v87_v14 = vadd.f32 %v86_v7, %v80_v6  ;;  %v132_v16 = vmul.f32 %v738_v13, %v843_v0  ;;  %v740_v18 = vld [vmem:[%s1371_s1 + $0x112] ss:$0 sm:$0xff]  ;;  %v138_v19 = vmul.f32 %v739_v17, %v848_v1  ;;  %v747_v21 = vld [vmem:[%s1371_s1 + $0x118] ss:$0 sm:$0xff]  ;;  %v119_v22 = vmul.f32 %v736_v12, %v862_v5  ;;  %v748_v25 = vld [vmem:[%s1371_s1 + $0x119] ss:$0 sm:$0xff] }
  0x14   :  { %v145_v20 = vmul.f32 %v740_v18, %v862_v5  ;;  %v252_v24 = vmul.f32 %v747_v21, %v843_v0  ;;  %v749_v26 = vld [vmem:[%s1371_s1 + $0x11a] ss:$0 sm:$0xff]  ;;  %v113_v28 = vadd.f32 %v112_v11, %v106_v10  ;;  %v258_v31 = vmul.f32 %v748_v25, %v848_v1  ;;  %v751_v32 = vld [vmem:[%s1371_s1 + $0x11c] ss:$0 sm:$0xff]  ;;  %v752_v33 = vld [vmem:[%s1371_s1 + $0x11d] ss:$0 sm:$0xff] }
  0x15   :  { %v896_v23 = vstv %s24_s14  ;;  %v139_v29 = vadd.f32 %v138_v19, %v132_v16  ;;  %v906_v30 = vstv %s836_s15  ;;  %v94_v34 = vadd.f32 %v93_v15, %v87_v14  ;;  %v741_v35 = vld [vmem:[%s1371_s1 + $0x113] ss:$0 sm:$0xff]  ;;  %v753_v39 = vld [vmem:[%s1371_s1 + $0x11e] ss:$0 sm:$0xff]  ;;  %s1304_s3 = sld [smem:[#allocation2 + $0x5]] }
  0x16   :  { %v919_v36 = vstv %s838_s16  ;;  %v278_v37 = vmul.f32 %v751_v32, %v843_v0  ;;  %v284_v38 = vmul.f32 %v752_v33, %v848_v1  ;;  %v755_v40 = vld [vmem:[%s1371_s1 + $0x120] ss:$0 sm:$0xff]  ;;  %v259_v42 = vadd.f32 %v258_v31, %v252_v24  ;;  %v756_v45 = vld [vmem:[%s1371_s1 + $0x121] ss:$0 sm:$0xff]  ;;  %v757_v46 = vld [vmem:[%s1371_s1 + $0x122] ss:$0 sm:$0xff] }
  0x17   :  { %v146_v41 = vadd.f32 %v145_v20, %v139_v29  ;;  %v265_v43 = vmul.f32 %v749_v26, %v862_v5  ;;  %v291_v44 = vmul.f32 %v753_v39, %v862_v5  ;;  %v304_v48 = vmul.f32 %v755_v40, %v843_v0  ;;  %v764_v51 = vld [vmem:[%s1371_s1 + $0x128] ss:$0 sm:$0xff]  ;;  %v765_v52 = vld [vmem:[%s1371_s1 + $0x129] ss:$0 sm:$0xff]  ;;  %v733_v53 = vld [vmem:[%s1371_s1 + $0x10b] ss:$0 sm:$0xff] }
  0x18   :  { %v285_v47 = vadd.f32 %v284_v38, %v278_v37  ;;  %v310_v49 = vmul.f32 %v756_v45, %v848_v1  ;;  %v317_v50 = vmul.f32 %v757_v46, %v862_v5  ;;  %v952_v55 = vstv %s872_s4  ;;  %v766_v58 = vld [vmem:[%s1371_s1 + $0x12a] ss:$0 sm:$0xff]  ;;  %v768_v59 = vld [vmem:[%s1371_s1 + $0x12c] ss:$0 sm:$0xff]  ;;  %v758_v62 = vld [vmem:[%s1371_s1 + $0x123] ss:$0 sm:$0xff] }
  0x19   :  { %v949_v54 = vadd.f32 %v741_v35, %v146_v41  ;;  %v419_v56 = vmul.f32 %v764_v51, %v843_v0  ;;  %v425_v57 = vmul.f32 %v765_v52, %v848_v1  ;;  %v120_v60 = vadd.f32 %v119_v22, %v113_v28  ;;  %v769_v3 = vld [vmem:[%s1371_s1 + $0x12d] ss:$0 sm:$0xff]  ;;  %v770_v4 = vld [vmem:[%s1371_s1 + $0x12e] ss:$0 sm:$0xff]  ;;  %v772_v9 = vld [vmem:[%s1371_s1 + $0x130] ss:$0 sm:$0xff] }
  0x1a   :  { %v311_v61 = vadd.f32 %v310_v49, %v304_v48  ;;  %v432_v63 = vmul.f32 %v766_v58, %v862_v5  ;;  %v445_v2 = vmul.f32 %v768_v59, %v843_v0  ;;  %v266_v6 = vadd.f32 %v265_v43, %v259_v42  ;;  %v773_v10 = vld [vmem:[%s1371_s1 + $0x131] ss:$0 sm:$0xff]  ;;  %v774_v11 = vld [vmem:[%s1371_s1 + $0x132] ss:$0 sm:$0xff]  ;;  %v737_v12 = vld [vmem:[%s1371_s1 + $0x10f] ss:$0 sm:$0xff] }
  0x1b   :  { %785 = vrcp.f32 %v949_v54  ;;  %v426_v7 = vadd.f32 %v425_v57, %v419_v56  ;;  %v451_v8 = vmul.f32 %v769_v3, %v848_v1  ;;  %v750_v13 = vld [vmem:[%s1371_s1 + $0x11b] ss:$0 sm:$0xff]  ;;  %v292_v14 = vadd.f32 %v291_v44, %v285_v47  ;;  %v754_v15 = vld [vmem:[%s1371_s1 + $0x11f] ss:$0 sm:$0xff]  ;;  %v767_v20 = vld [vmem:[%s1371_s1 + $0x12b] ss:$0 sm:$0xff] }
  0x1c   :  { %v318_v16 = vadd.f32 %v317_v50, %v311_v61  ;;  %v458_v17 = vmul.f32 %v770_v4, %v862_v5  ;;  %v471_v18 = vmul.f32 %v772_v9, %v843_v0  ;;  %v477_v22 = vmul.f32 %v773_v10, %v848_v1  ;;  %v1003_v25 = vld [vmem:[%s1371_s1 + $0x141] ss:$0 sm:$0xff]  ;;  %v68_v26 = vld [vmem:[%s1371_s1 + $0x142] sm:$0x1]  ;;  %v771_v38 = vld [vmem:[%s1371_s1 + $0x12f] ss:$0 sm:$0xff] }
  0x1d   :  { %v433_v19 = vadd.f32 %v432_v63, %v426_v7  ;;  %v452_v21 = vadd.f32 %v451_v8, %v445_v2  ;;  %v484_v24 = vmul.f32 %v774_v11, %v862_v5  ;;  %v100_v28 = vadd.f32 %v733_v53, %v94_v34  ;;  %v775_v34 = vld [vmem:[%s1371_s1 + $0x133] ss:$0 sm:$0xff]  ;;  %v606_v43 = vld [vmem:[%s1371_s1 + $0xf8] sm:$0xff]  ;;  %v607_v46 = vld [vmem:[%s1371_s1 + $0x100] sm:$0xff]  ;;  %s1298_s16 = sld [smem:[#allocation2 + $0x4]] }
  0x1e   :  { %v1008_v29 = vadd.f32 %v758_v62, %v318_v16  ;;  %v69_v31 = vmul.f32 0.5, %v68_v26  ;;  %v1011_v32 = vshrl.u32 %v71_v27, 7  ;;  %v126_v33 = vadd.f32 %v737_v12, %v120_v60  ;;  %v605_v42 = vld [vmem:[%s1371_s1 + $0xf0] sm:$0xff]  ;;  %v388_v48 = vld [vmem:[%s1371_s1 + $0x68] sm:$0xff]  ;;  %v390_v49 = vld [vmem:[%s1371_s1 + $0x80] sm:$0xff] }
  0x1f   :  { %v272_v35 = vadd.f32 %v750_v13, %v266_v6  ;;  %v459_v37 = vadd.f32 %v458_v17, %v452_v21  ;;  %v478_v39 = vadd.f32 %v477_v22, %v471_v18  ;;  %v298_v40 = vadd.f32 %v754_v15, %v292_v14  ;;  %v1061_v12 = vld [vmem:[%s1371_s1 + $0x138] ss:$0 sm:$0xff]  ;;  %v1068_v17 = vld [vmem:[%s1371_s1 + $0x139] ss:$0 sm:$0xff]  ;;  %v1073_v18 = vld [vmem:[%s1371_s1 + $0x13b] ss:$0 sm:$0xff] }
  0x20   :  { %787 = vrcp.f32 %v1008_v29  ;;  %v1017_v41 = vadd.f32 %v767_v20, %v433_v19  ;;  %v173_v27 = vsub.f32 %v949_v54, %v1003_v25  ;;  %v73_v45 = vsub.s32 0, %v1011_v32  ;;  %v1078_v19 = vld [vmem:[%s1371_s1 + $0x13c] ss:$0 sm:$0xff]  ;;  %v193_v54 = vld [vmem:[%s1371_s1 + $0x30] sm:$0xff] }
  0x21   :  { %v485_v44 = vadd.f32 %v484_v24, %v478_v39  ;;  %789 = vrcp.f32 %v69_v31  ;;  %v608_v47 = vsub.f32 %v605_v42, %v843_v0  ;;  %v1041_v50 = vadd.f32 %v771_v38, %v459_v37 }
  0x22   :  { %v341_v51 = vsub.f32 %v1008_v29, %v1003_v25  ;;  %v609_v52 = vsub.f32 %v606_v43, %v848_v1  ;;  %v610_v53 = vsub.f32 %v607_v46, %v862_v5  ;;  %v1050_v59 = vsub.f32 %v388_v48, %v843_v0  ;;  %v1097_v48 = vld [vmem:[%s1371_s1 + $0x13a] ss:$0 sm:$0xff] }
  0x23   :  { %v1047_v56 = vadd.f32 %v775_v34, %v485_v44  ;;  %v611_v57 = vand.u32 2147483647, %v608_v47  ;;  %v675_v58 = vmul.f32 %v608_v47, %v608_v47  ;;  %v1053_v63 = vsub.f32 %v390_v49, %v848_v1 }
  0x24   :  { %v612_v60 = vand.u32 2147483647, %v609_v52  ;;  %v613_v61 = vand.u32 2147483647, %v610_v53  ;;  %v676_v62 = vmul.f32 %v609_v52, %v609_v52  ;;  %v1056_v4 = vmul.f32 %v610_v53, %v610_v53 }
  0x25   :  { %v786_v2 = vpop.eup %785  ;;  %791 = vrcp.f32 %v1047_v56  ;;  %vm614_vm1 = vcmp.lt.f32.partialorder %v611_v57, 1.0  ;;  %v617_v3 = vmul.f32 0.5, %v611_v57  ;;  %v781_v11 = vadd.f32 -0.5, %v611_v57 }
  0x26   :  { %v155_v6 = vmul.f32 %v786_v2, %v100_v28  ;;  %v160_v7 = vmul.f32 %v786_v2, %v126_v33  ;;  %vm615_vm2 = vcmp.lt.f32.partialorder %v612_v60, 1.0  ;;  %vm616_vm3 = vcmp.lt.f32.partialorder %v613_v61, 1.0  ;;  %v175_v2 = vld [vmem:[%s1371_s1] sm:$0xff] }
  0x27   :  { %v618_v8 = vmul.f32 0.5, %v612_v60  ;;  %v619_v9 = vmul.f32 0.5, %v613_v61  ;;  %v620_v10 = vmul.f32 %v617_v3, %v611_v57  ;;  %v782_v15 = vadd.f32 -0.5, %v612_v60  ;;  %v184_v3 = vld [vmem:[%s1371_s1 + $0x18] sm:$0xff] }
  0x28   :  { %v157_v13 = vmul.f32 %v896_v23, %v155_v6  ;;  %v162_v14 = vmul.f32 %v919_v36, %v160_v7  ;;  %v783_v16 = vadd.f32 -0.5, %v613_v61  ;;  %v508_v20 = vsub.f32 %v1047_v56, %v1003_v25 }
  0x29   :  { %v621_v21 = vmul.f32 %v618_v8, %v612_v60  ;;  %v622_v22 = vmul.f32 %v619_v9, %v613_v61  ;;  %v626_v24 = vsel %vm614_vm1, %v620_v10, %v781_v11  ;;  %v1086_v33 = vadd.f32 %v676_v62, %v675_v58 }
  0x2a   :  { %v788_v26 = vpop.eup %787  ;;  %v159_v28 = vadd.f32 %v906_v30, %v157_v13  ;;  %v164_v31 = vadd.f32 %v952_v55, %v162_v14  ;;  %v629_v32 = vsel %vm238_vm0, %v626_v24, 0.0  ;;  %vm700_vm1 = vcmask 8192  }
  0x2b   :  { %v790_v37 = vpop.eup %789  ;;  %v327_v38 = vmul.f32 %v788_v26, %v272_v35  ;;  %v330_v39 = vmul.f32 %v788_v26, %v298_v40  ;;  %v627_v34 = vsel %vm615_vm2, %v621_v21, %v782_v15  ;;  %v628_v42 = vsel %vm616_vm3, %v622_v22, %v783_v16  ;;  %v1102_v35 = vld [vmem:[%s1371_s1 + $0x13d] ss:$0 sm:$0xff] }
  0x2c   :  { %v165_v43 = vmul.f32 %v1061_v12, %v159_v28  ;;  %v166_v44 = vmul.f32 %v1068_v17, %v164_v31  ;;  %v169_v46 = vmul.f32 %v1073_v18, %v159_v28  ;;  %v170_v47 = vmul.f32 %v1078_v19, %v164_v31  ;;  %v352_v28 = vld [vmem:[%s1371_s1 + $0x20] sm:$0xff] }
  0x2d   :  { %v328_v40 = vmul.f32 %v327_v38, %v896_v23  ;;  %v331_v49 = vmul.f32 %v330_v39, %v919_v36  ;;  %v1106_v52 = vrot.slane %v790_v37, %v73_v45  ;;  %v630_v53 = vsel %vm238_vm0, %v627_v34, 0.0  ;;  %v202_v45 = vld [vmem:[%s1371_s1 + $0x48] sm:$0xff] }
  0x2e   :  { %v167_v57 = vadd.f32 %v166_v44, %v165_v43  ;;  %v171_v58 = vadd.f32 %v170_v47, %v169_v46  ;;  %v1109_v60 = vadd.f32 %v630_v53, %v629_v32  ;;  %v1112_v61 = vsel %vm238_vm0, %v628_v42, 0.0 }
  0x2f   :  { %v792_v62 = vpop.eup %791  ;;  %v329_v6 = vadd.f32 %v328_v40, %v906_v30  ;;  %v332_v7 = vadd.f32 %v331_v49, %v952_v55  ;;  %v1129_v8 = vmul.f32 %v173_v27, %v1106_v52  ;;  %v1135_v9 = vmul.f32 %v341_v51, %v1106_v52 }
  0x30   :  { %v168_v10 = vadd.f32 %v1097_v48, %v167_v57  ;;  %v172_v11 = vadd.f32 %v1102_v35, %v171_v58  ;;  %v494_v13 = vmul.f32 %v792_v62, %v1017_v41  ;;  %v497_v14 = vmul.f32 %v792_v62, %v1041_v50  ;;  %v343_v50 = vld [vmem:[%s1371_s1 + $0x8] sm:$0xff] }
  0x31   :  { %v333_v27 = vmul.f32 %v1061_v12, %v329_v6  ;;  %v334_v15 = vmul.f32 %v1068_v17, %v332_v7  ;;  %v337_v29 = vmul.f32 %v1073_v18, %v329_v6  ;;  %v338_v51 = vmul.f32 %v1078_v19, %v332_v7 }
  0x32   :  { %v176_v16 = vsub.f32 %v175_v2, %v168_v10  ;;  %v185_v21 = vsub.f32 %v184_v3, %v172_v11  ;;  %v203_v22 = vsub.f32 %v202_v45, %v172_v11  ;;  %v495_v24 = vmul.f32 %v494_v13, %v896_v23 }
  0x33   :  { %v335_v41 = vadd.f32 %v334_v15, %v333_v27  ;;  %v339_v26 = vadd.f32 %v338_v51, %v337_v29  ;;  %v498_v31 = vmul.f32 %v497_v14, %v919_v36  ;;  %v194_v32 = vsub.f32 %v193_v54, %v168_v10 }
  0x34   :  { %v177_v37 = vand.u32 2147483647, %v176_v16  ;;  %v186_v38 = vand.u32 2147483647, %v185_v21  ;;  %v1156_v39 = vand.u32 2147483647, %v203_v22  ;;  %v496_v34 = vadd.f32 %v495_v24, %v906_v30 }
  0x35   :  { %v1160_v23 = vadd.f32 %v1097_v48, %v335_v41  ;;  %v1163_v42 = vadd.f32 %v1102_v35, %v339_v26  ;;  %v499_v43 = vadd.f32 %v498_v31, %v952_v55  ;;  %v195_v44 = vand.u32 2147483647, %v194_v32  ;;  %v519_v16 = vld [vmem:[%s1371_s1 + $0x28] sm:$0xff]  ;;  %v370_v31 = vld [vmem:[%s1371_s1 + $0x50] sm:$0xff] }
  0x36   :  { %vm178_vm4 = vcmp.lt.f32.partialorder %v177_v37, 1.0  ;;  %v179_v46 = vmul.f32 0.5, %v177_v37  ;;  %v742_v47 = vadd.f32 -0.5, %v177_v37  ;;  %vm187_vm5 = vcmp.lt.f32.partialorder %v186_v38, 1.0  ;;  %v211_v24 = vld [vmem:[%s1371_s1 + $0xa8] sm:$0xff]  ;;  %v379_v32 = vld [vmem:[%s1371_s1 + $0xb0] sm:$0xff] }
  0x37   :  { %v188_v36 = vmul.f32 0.5, %v186_v38  ;;  %v743_v40 = vadd.f32 -0.5, %v186_v38  ;;  %v344_v49 = vsub.f32 %v343_v50, %v1160_v23  ;;  %v353_v53 = vsub.f32 %v352_v28, %v1163_v42 }
  0x38   :  { %v180_v30 = vmul.f32 %v179_v46, %v177_v37  ;;  %v500_v57 = vmul.f32 %v1061_v12, %v496_v34  ;;  %v501_v58 = vmul.f32 %v1068_v17, %v499_v43  ;;  %v504_v62 = vmul.f32 %v1073_v18, %v496_v34  ;;  %v510_v18 = vld [vmem:[%s1371_s1 + $0x10] sm:$0xff] }
  0x39   :  { %v189_v2 = vmul.f32 %v188_v36, %v186_v38  ;;  %v345_v55 = vand.u32 2147483647, %v344_v49  ;;  %v354_v3 = vand.u32 2147483647, %v353_v53  ;;  %v505_v45 = vmul.f32 %v1078_v19, %v499_v43 }
  0x3a   :  { %v182_v6 = vsel %vm178_vm4, %v180_v30, %v742_v47  ;;  %v502_v7 = vadd.f32 %v501_v58, %v500_v57  ;;  %vm196_vm6 = vcmp.lt.f32.partialorder %v195_v44, 1.0  ;;  %v197_v10 = vmul.f32 0.5, %v195_v44 }
  0x3b   :  { %v191_v11 = vsel %vm187_vm5, %v189_v2, %v743_v40  ;;  %vm346_vm7 = vcmp.lt.f32.partialorder %v345_v55, 1.0  ;;  %v347_v13 = vmul.f32 0.5, %v345_v55  ;;  %v759_v14 = vadd.f32 -0.5, %v345_v55 }
  0x3c   :  { %v192_v12 = vadd.f32 %v191_v11, %v182_v6  ;;  %vm355_vm8 = vcmp.lt.f32.partialorder %v354_v3, 1.0  ;;  %v356_v17 = vmul.f32 0.5, %v354_v3  ;;  %v760_v54 = vadd.f32 -0.5, %v354_v3 }
  0x3d   :  { %v348_v27 = vmul.f32 %v347_v13, %v345_v55  ;;  %v1178_v19 = vadd.f32 %v1097_v48, %v502_v7  ;;  %v506_v15 = vadd.f32 %v505_v45, %v504_v62  ;;  %v198_v29 = vmul.f32 %v197_v10, %v195_v44  ;;  %v361_v48 = vld [vmem:[%s1371_s1 + $0x38] sm:$0xff] }
  0x3e   :  { %v357_v51 = vmul.f32 %v356_v17, %v354_v3  ;;  %v744_v21 = vadd.f32 -0.5, %v195_v44  ;;  %vm205_vm9 = vcmp.lt.f32.partialorder %v1156_v39, 1.0  ;;  %v206_v22 = vmul.f32 0.5, %v1156_v39 }
  0x3f   :  { %v350_v41 = vsel %vm346_vm7, %v348_v27, %v759_v14  ;;  %v1193_v26 = vadd.f32 %v1102_v35, %v506_v15  ;;  %v511_v50 = vsub.f32 %v510_v18, %v1178_v19  ;;  %v745_v28 = vadd.f32 -0.5, %v1156_v39  ;;  %v528_v27 = vld [vmem:[%s1371_s1 + $0x40] sm:$0xff] }
  0x40   :  { %v351_v37 = vadd.f32 %v350_v41, %v192_v12  ;;  %v359_v38 = vsel %vm355_vm8, %v357_v51, %v760_v54  ;;  %v200_v34 = vsel %vm196_vm6, %v198_v29, %v744_v21  ;;  %v207_v35 = vmul.f32 %v206_v22, %v1156_v39  ;;  %v537_v21 = vld [vmem:[%s1371_s1 + $0x58] sm:$0xff] }
  0x41   :  { %v512_v43 = vand.u32 2147483647, %v511_v50  ;;  %v520_v46 = vsub.f32 %v519_v16, %v1193_v26  ;;  %v212_v47 = vsub.f32 %v211_v24, %v1129_v8  ;;  %v362_v36 = vsub.f32 %v361_v48, %v1160_v23  ;;  %v546_v22 = vld [vmem:[%s1371_s1 + $0xb8] sm:$0xff] }
  0x42   :  { %v360_v40 = vadd.f32 %v359_v38, %v351_v37  ;;  %v209_v49 = vsel %vm205_vm9, %v207_v35, %v745_v28  ;;  %v371_v53 = vsub.f32 %v370_v31, %v1163_v42  ;;  %v380_v30 = vsub.f32 %v379_v32, %v1135_v9  ;;  %v392_v50 = vld [vmem:[%s1371_s1 + $0x98] sm:$0xff] }
  0x43   :  { %vm513_vm10 = vcmp.lt.f32.partialorder %v512_v43, 1.0  ;;  %v514_v44 = vmul.f32 0.5, %v512_v43  ;;  %v776_v57 = vadd.f32 -0.5, %v512_v43  ;;  %v521_v58 = vand.u32 2147483647, %v520_v46 }
  0x44   :  { %v210_v62 = vadd.f32 %v209_v49, %v200_v34  ;;  %v213_v2 = vand.u32 2147483647, %v212_v47  ;;  %v363_v55 = vand.u32 2147483647, %v362_v36  ;;  %v372_v3 = vand.u32 2147483647, %v371_v53 }
  0x45   :  { %v515_v45 = vmul.f32 %v514_v44, %v512_v43  ;;  %vm522_vm11 = vcmp.lt.f32.partialorder %v521_v58, 1.0  ;;  %v523_v8 = vmul.f32 0.5, %v521_v58  ;;  %v777_v23 = vadd.f32 -0.5, %v521_v58 }
  0x46   :  { %vm214_vm12 = vcmp.lt.f32.partialorder %v213_v2, 1.0  ;;  %v215_v6 = vmul.f32 0.5, %v213_v2  ;;  %v746_v39 = vadd.f32 -0.5, %v213_v2  ;;  %vm364_vm13 = vcmp.lt.f32.partialorder %v363_v55, 1.0 }
  0x47   :  { %v517_v42 = vsel %vm513_vm10, %v515_v45, %v776_v57  ;;  %v524_v7 = vmul.f32 %v523_v8, %v521_v58  ;;  %v365_v9 = vmul.f32 0.5, %v363_v55  ;;  %v761_v10 = vadd.f32 -0.5, %v363_v55  ;;  %v222_v45 = vld [vmem:[%s1371_s1 + $0x78] sm:$0xff] }
  0x48   :  { %v518_v11 = vadd.f32 %v517_v42, %v360_v40  ;;  %v216_v13 = vmul.f32 %v215_v6, %v213_v2  ;;  %vm373_vm14 = vcmp.lt.f32.partialorder %v372_v3, 1.0  ;;  %v374_v14 = vmul.f32 0.5, %v372_v3 }
  0x49   :  { %v526_v12 = vsel %vm522_vm11, %v524_v7, %v777_v23  ;;  %v366_v17 = vmul.f32 %v365_v9, %v363_v55  ;;  %v762_v54 = vadd.f32 -0.5, %v372_v3  ;;  %v381_v18 = vand.u32 2147483647, %v380_v30 }
  0x4a   :  { %v527_v15 = vadd.f32 %v526_v12, %v518_v11  ;;  %v218_v29 = vsel %vm214_vm12, %v216_v13, %v746_v39  ;;  %v375_v51 = vmul.f32 %v374_v14, %v372_v3  ;;  %v509_v16 = vmul.f32 %v508_v20, %v1106_v52  ;;  %v220_v3 = vld [vmem:[%s1371_s1 + $0x60] sm:$0xff] }
  0x4b   :  { %v368_v24 = vsel %vm364_vm13, %v366_v17, %v761_v10  ;;  %vm382_vm15 = vcmp.lt.f32.partialorder %v381_v18, 1.0  ;;  %v383_v48 = vmul.f32 0.5, %v381_v18  ;;  %v763_v41 = vadd.f32 -0.5, %v381_v18  ;;  %v224_v10 = vld [vmem:[%s1371_s1 + $0x90] sm:$0xff] }
  0x4c   :  { %v581_v25 = vsel %vm238_vm0, %v527_v15, 0.0  ;;  %v369_v56 = vadd.f32 %v368_v24, %v210_v62  ;;  %v377_v20 = vsel %vm373_vm14, %v375_v51, %v762_v54  ;;  %v529_v52 = vsub.f32 %v528_v27, %v1178_v19 }
  0x4d   :  { %v582_v28 = vrot.slane %v581_v25, 4  ;;  %v384_v31 = vmul.f32 %v383_v48, %v381_v18  ;;  %v538_v32 = vsub.f32 %v537_v21, %v1193_v26  ;;  %v547_v37 = vsub.f32 %v546_v22, %v509_v16  ;;  %v555_v48 = vld [vmem:[%s1371_s1 + $0x70] sm:$0xff] }
  0x4e   :  { %v378_v38 = vadd.f32 %v377_v20, %v369_v56  ;;  %v530_v34 = vand.u32 2147483647, %v529_v52  ;;  %v633_v35 = vadd.f32 %v1112_v61, %v1109_v60  ;;  %v393_v43 = vsub.f32 %v392_v50, %v862_v5  ;;  %v559_v56 = vld [vmem:[%s1371_s1 + $0xa0] sm:$0xff]  ;;  %v649_v20 = vld [vmem:[%s1371_s1 + $0xd8] sm:$0xff] }
  0x4f   :  { %v583_v46 = vadd.f32 %v582_v28, %v581_v25  ;;  %v386_v47 = vsel %vm382_vm15, %v384_v31, %v763_v41  ;;  %v539_v36 = vand.u32 2147483647, %v538_v32  ;;  %v548_v40 = vand.u32 2147483647, %v547_v37  ;;  %v557_v25 = vld [vmem:[%s1371_s1 + $0x88] sm:$0xff] }
  0x50   :  { %v387_v49 = vadd.f32 %v386_v47, %v218_v29  ;;  %vm531_vm2 = vcmp.lt.f32.partialorder %v530_v34, 1.0  ;;  %v532_v19 = vmul.f32 0.5, %v530_v34  ;;  %v778_v53 = vadd.f32 -0.5, %v530_v34 }
  0x51   :  { %v584_v30 = vrot.slane %v583_v46, 2  ;;  %vm540_vm3 = vcmp.lt.f32.partialorder %v539_v36, 1.0  ;;  %v541_v26 = vmul.f32 0.5, %v539_v36  ;;  %v779_v44 = vadd.f32 -0.5, %v539_v36 }
  0x52   :  { %v533_v57 = vmul.f32 %v532_v19, %v530_v34  ;;  %vm549_vm4 = vcmp.lt.f32.partialorder %v548_v40, 1.0  ;;  %v550_v58 = vmul.f32 0.5, %v548_v40  ;;  %v780_v60 = vadd.f32 -0.5, %v548_v40 }
  0x53   :  { %v585_v61 = vadd.f32 %v584_v30, %v583_v46  ;;  %v542_v62 = vmul.f32 %v541_v26, %v539_v36  ;;  %v634_v2 = vrot.slane %v633_v35, 4  ;;  %v394_v55 = vmul.f32 %v1050_v59, %v1050_v59 }
  0x54   :  { %v535_v8 = vsel %vm531_vm2, %v533_v57, %v778_v53  ;;  %v551_v23 = vmul.f32 %v550_v58, %v548_v40  ;;  %v395_v6 = vmul.f32 %v1053_v63, %v1053_v63  ;;  %v397_v39 = vmul.f32 %v393_v43, %v393_v43 }
  0x55   :  { %v586_v42 = vrot.slane %v585_v61, 1  ;;  %v536_v7 = vadd.f32 %v535_v8, %v378_v38  ;;  %v544_v9 = vsel %vm540_vm3, %v542_v62, %v779_v44  ;;  %v635_v59 = vadd.f32 %v634_v2, %v633_v35  ;;  %v651_v35 = vld [vmem:[%s1371_s1 + $0xe0] sm:$0xff]  ;;  %v653_v44 = vld [vmem:[%s1371_s1 + $0xe8] sm:$0xff] }
  0x56   :  { %v553_v11 = vsel %vm549_vm4, %v551_v23, %v780_v60  ;;  %v396_v13 = vadd.f32 %v395_v6, %v394_v55  ;;  %v221_v14 = vsub.f32 %v220_v3, %v843_v0  ;;  %v223_v12 = vsub.f32 %v222_v45, %v848_v1 }
  0x57   :  { %v587_v17 = vadd.f32 %v586_v42, %v585_v61  ;;  %v545_v54 = vadd.f32 %v544_v9, %v536_v7  ;;  %v554_v63 = vadd.f32 %v553_v11, %v387_v49  ;;  %v636_v18 = vrot.slane %v635_v59, 2 }
  0x58   :  { %v1258_v27 = vadd.f32 %v397_v39, %v396_v13  ;;  %v225_v15 = vsub.f32 %v224_v10, %v862_v5  ;;  %v226_v29 = vmul.f32 %v221_v14, %v221_v14  ;;  %v227_v51 = vmul.f32 %v223_v12, %v223_v12 }
  0x59   :  { %v1261_v16 = vmul.f32 0.020833334, %v587_v17  ;;  %v589_v21 = vsel %vm238_vm0, %v545_v54, 0.0  ;;  %v597_v22 = vsel %vm238_vm0, %v554_v63, 0.0  ;;  %v637_v24 = vadd.f32 %v636_v18, %v635_v59 }
  0x5a   :  { %v590_v41 = vrot.slane %v589_v21, 4  ;;  %v598_v50 = vrot.slane %v597_v22, 4  ;;  %793 = vrsqrt.f32 %v1258_v27  ;;  %v1285_v28 = vadd.f32 %v1056_v4, %v1086_v33 }
  0x5b   :  { %701 = vst.msk [vmem:[%s1372_s2] sm:$0x1] %vm700_vm1, %v1261_v16  ;;  %v638_v52 = vrot.slane %v637_v24, 1  ;;  %v228_v31 = vadd.f32 %v227_v51, %v226_v29  ;;  %v229_v38 = vmul.f32 %v225_v15, %v225_v15  ;;  %v556_v34 = vsub.f32 %v555_v48, %v843_v0 }
  0x5c   :  { %v591_v32 = vadd.f32 %v590_v41, %v589_v21  ;;  %v599_v37 = vadd.f32 %v598_v50, %v597_v22  ;;  %v558_v46 = vsub.f32 %v557_v25, %v848_v1  ;;  %v560_v47 = vsub.f32 %v559_v56, %v862_v5 }
  0x5d   :  { %v639_v43 = vadd.f32 %v638_v52, %v637_v24  ;;  %v650_v36 = vsub.f32 %v649_v20, %v843_v0  ;;  %v230_v33 = vadd.f32 %v229_v38, %v228_v31  ;;  %v561_v49 = vmul.f32 %v556_v34, %v556_v34 }
  0x5e   :  { %v592_v40 = vrot.slane %v591_v32, 2  ;;  %v600_v4 = vrot.slane %v599_v37, 2  ;;  %v562_v53 = vmul.f32 %v558_v46, %v558_v46  ;;  %v564_v30 = vmul.f32 %v560_v47, %v560_v47 }
  0x5f   :  { %v640_v19 = vmul.f32 0.041666668, %v639_v43  ;;  %v652_v26 = vsub.f32 %v651_v35, %v848_v1  ;;  %795 = vrsqrt.f32 %v230_v33  ;;  %v654_v1 = vsub.f32 %v653_v44, %v862_v5 }
  0x60   :  { %v593_v57 = vadd.f32 %v592_v40, %v591_v32  ;;  %v601_v58 = vadd.f32 %v600_v4, %v599_v37  ;;  %v563_v0 = vadd.f32 %v562_v53, %v561_v49  ;;  %v655_v62 = vmul.f32 %v650_v36, %v650_v36 }
  0x61   :  { %703 = vst.msk [vmem:[%s1372_s2 + $0x2] sm:$0x1] %vm700_vm1, %v640_v19  ;;  %vm401_vm5 = vcmp.eq.f32.partialorder %v1258_v27, inf  ;;  %v656_v55 = vmul.f32 %v652_v26, %v652_v26  ;;  %797 = vrsqrt.f32 %v1285_v28  ;;  %v404_v23 = vand.u32 2147483648, %v1258_v27 }
  0x62   :  { %v594_v60 = vrot.slane %v593_v57, 1  ;;  %v602_v61 = vrot.slane %v601_v58, 1  ;;  %v565_v2 = vadd.f32 %v564_v30, %v563_v0  ;;  %v658_v6 = vmul.f32 %v654_v1, %v654_v1 }
  0x63   :  { %vm403_vm6 = vcmp.eq.f32.partialorder %v1258_v27, 0.0  ;;  %v657_v7 = vadd.f32 %v656_v55, %v655_v62  ;;  %v643_v13 = vstv %s1298_s16  ;;  %v646_v14 = vstv %s1304_s3 }
  0x64   :  { %v794_v3 = vpop.eup %793  ;;  %v595_v45 = vadd.f32 %v594_v60, %v593_v57  ;;  %v603_v8 = vadd.f32 %v602_v61, %v601_v58  ;;  %799 = vrsqrt.f32 %v565_v2  ;;  %vm233_vm7 = vcmp.eq.f32.partialorder %v230_v33, inf }
  0x65   :  { %v400_v39 = vmul.f32 %v794_v3, %v1258_v27  ;;  %v659_v11 = vadd.f32 %v658_v6, %v657_v7  ;;  %v236_v18 = vand.u32 2147483648, %v230_v33  ;;  %vm235_vm8 = vcmp.eq.f32.partialorder %v230_v33, 0.0 }
  0x66   :  { %v596_v5 = vmul.f32 0.020833334, %v595_v45  ;;  %v604_v42 = vmul.f32 0.041666668, %v603_v8  ;;  %vm682_vm9 = vcmp.eq.f32.partialorder %v1285_v28, inf  ;;  %vm684_vm10 = vcmp.eq.f32.partialorder %v1285_v28, 0.0 }
  0x67   :  { %v402_v9 = vsel %vm401_vm5, %v1258_v27, %v400_v39  ;;  %801 = vrsqrt.f32 %v659_v11  ;;  %v647_v27 = vmul.f32 %v646_v14, %v640_v19  ;;  %v685_v24 = vand.u32 2147483648, %v1285_v28 }
  0x68   :  { %v641_v59 = vmul.f32 0.5, %v596_v5  ;;  %v405_v10 = vsel %vm403_vm6, %v404_v23, %v402_v9  ;;  %vm568_vm11 = vcmp.eq.f32.partialorder %v565_v2, inf  ;;  %vm570_vm12 = vcmp.eq.f32.partialorder %v565_v2, 0.0 }
  0x69   :  { %v406_v12 = vsel %vm238_vm0, %v405_v10, 0.0  ;;  %v796_v17 = vpop.eup %795  ;;  %v571_v52 = vand.u32 2147483648, %v565_v2  ;;  %vm662_vm13 = vcmp.eq.f32.partialorder %v659_v11, inf  ;;  %v665_v36 = vand.u32 2147483648, %v659_v11 }
  0x6a   :  { %v642_v54 = vadd.f32 %v641_v59, %v604_v42  ;;  %v407_v63 = vrot.slane %v406_v12, 4  ;;  %v232_v15 = vmul.f32 %v796_v17, %v230_v33  ;;  %vm664_vm14 = vcmp.eq.f32.partialorder %v659_v11, 0.0 }
  0x6b   :  { %v798_v21 = vpop.eup %797 }
  0x6c   :  { %v644_v29 = vmul.f32 %v643_v13, %v642_v54  ;;  %702 = vst.msk [vmem:[%s1372_s2 + $0x1] sm:$0x1] %vm700_vm1, %v642_v54  ;;  %v408_v51 = vadd.f32 %v407_v63, %v406_v12  ;;  %v234_v22 = vsel %vm233_vm7, %v230_v33, %v232_v15  ;;  %v681_v25 = vmul.f32 %v798_v21, %v1285_v28 }
  0x6d   :  { %v237_v50 = vsel %vm235_vm8, %v236_v18, %v234_v22 }
  0x6e   :  { %v645_v48 = vadd.f32 %v644_v29, %v1261_v16  ;;  %v409_v41 = vrot.slane %v408_v51, 2  ;;  %v800_v56 = vpop.eup %799  ;;  %v239_v20 = vsel %vm238_vm0, %v237_v50, 0.0  ;;  %v683_v34 = vsel %vm682_vm9, %v1285_v28, %v681_v25 }
  0x6f   :  { %v240_v37 = vrot.slane %v239_v20, 4  ;;  %v567_v38 = vmul.f32 %v800_v56, %v565_v2  ;;  %v686_v46 = vsel %vm684_vm10, %v685_v24, %v683_v34 }
  0x70   :  { %v648_v31 = vadd.f32 %v647_v27, %v645_v48  ;;  %v410_v32 = vadd.f32 %v409_v41, %v408_v51  ;;  %v687_v40 = vsel %vm238_vm0, %v686_v46, 0.0 }
  0x71   :  { %v241_v35 = vadd.f32 %v240_v37, %v239_v20  ;;  %v569_v43 = vsel %vm568_vm11, %v565_v2, %v567_v38  ;;  %v802_v4 = vpop.eup %801  ;;  %v688_v53 = vrot.slane %v687_v40, 4 }
  0x72   :  { %704 = vst.msk [vmem:[%s1372_s2 + $0x3] sm:$0x1] %vm700_vm1, %v648_v31  ;;  %v411_v16 = vrot.slane %v410_v32, 1  ;;  %v572_v47 = vsel %vm570_vm12, %v571_v52, %v569_v43  ;;  %v661_v26 = vmul.f32 %v802_v4, %v659_v11 }
  0x73   :  { %v242_v49 = vrot.slane %v241_v35, 2  ;;  %v573_v19 = vsel %vm238_vm0, %v572_v47, 0.0  ;;  %v689_v58 = vadd.f32 %v688_v53, %v687_v40 }
  0x74   :  { %v412_v33 = vadd.f32 %v411_v16, %v410_v32  ;;  %v574_v30 = vrot.slane %v573_v19, 4  ;;  %v663_v28 = vsel %vm662_vm13, %v659_v11, %v661_v26 }
  0x75   :  { %v243_v57 = vadd.f32 %v242_v49, %v241_v35  ;;  %v666_v61 = vsel %vm664_vm14, %v665_v36, %v663_v28  ;;  %v690_v1 = vrot.slane %v689_v58, 2 }
  0x76   :  { %v413_v44 = vmul.f32 0.125, %v412_v33  ;;  %v575_v0 = vadd.f32 %v574_v30, %v573_v19  ;;  %v667_v2 = vsel %vm238_vm0, %v666_v61, 0.0 }
  0x77   :  { %v244_v60 = vrot.slane %v243_v57, 1  ;;  %v668_v3 = vrot.slane %v667_v2, 4  ;;  %v691_v45 = vadd.f32 %v690_v1, %v689_v58 }
  0x78   :  { %705 = vst.msk [vmem:[%s1372_s2 + $0x4] sm:$0x1] %vm700_vm1, %v413_v44  ;;  %711 = vst.msk [vmem:[%s1372_s2 + $0xa] sm:$0x1] %vm700_vm1, %v413_v44  ;;  %v576_v62 = vrot.slane %v575_v0, 2 }
  0x79   :  { %v245_v55 = vadd.f32 %v244_v60, %v243_v57  ;;  %v669_v6 = vadd.f32 %v668_v3, %v667_v2  ;;  %v692_v39 = vrot.slane %v691_v45, 1 }
  0x7a   :  { %v577_v8 = vadd.f32 %v576_v62, %v575_v0 }
  0x7b   :  { %v246_v23 = vmul.f32 0.125, %v245_v55  ;;  %v670_v42 = vrot.slane %v669_v6, 2  ;;  %v693_v7 = vadd.f32 %v692_v39, %v691_v45 }
  0x7c   :  { %v578_v5 = vrot.slane %v577_v8, 1 }
  0x7d   :  { %710 = vst.msk [vmem:[%s1372_s2 + $0x9] sm:$0x1] %vm700_vm1, %v246_v23  ;;  %v695_v59 = vmin.f32 %v246_v23, %v413_v44  ;;  %v696_v10 = vadd.f32 %v413_v44, %v246_v23  ;;  %v671_v11 = vadd.f32 %v670_v42, %v669_v6  ;;  %v694_v13 = vmul.f32 0.125, %v693_v7 }
  0x7e   :  { %v579_v9 = vadd.f32 %v578_v5, %v577_v8 }
  0x7f   :  { %v672_v12 = vrot.slane %v671_v11, 1  ;;  %709 = vst.msk [vmem:[%s1372_s2 + $0x8] sm:$0x1] %vm700_vm1, %v694_v13 }
  0x80   :  { %v580_v14 = vmul.f32 0.125, %v579_v9 }
  0x81   :  { %v673_v63 = vadd.f32 %v672_v12, %v671_v11 }
  0x82   :  { %v697_v17 = vmin.f32 %v695_v59, %v580_v14  ;;  %712 = vst.msk [vmem:[%s1372_s2 + $0xb] sm:$0x1] %vm700_vm1, %v580_v14  ;;  %v698_v54 = vadd.f32 %v696_v10, %v580_v14 }
  0x83   :  { %v674_v15 = vmul.f32 0.125, %v673_v63 }
  0x84   :  { %706 = vst.msk [vmem:[%s1372_s2 + $0x5] sm:$0x1] %vm700_vm1, %v697_v17  ;;  %v699_v18 = vmul.f32 0.33333334, %v698_v54 }
  0x85   :  { %708 = vst.msk [vmem:[%s1372_s2 + $0x7] sm:$0x1] %vm700_vm1, %v674_v15 }
  0x86   :  { %707 = vst.msk [vmem:[%s1372_s2 + $0x6] sm:$0x1] %vm700_vm1, %v699_v18 }
  0x87   :  { %717 = vsyncpa [#allocation3], 1 }

</bundles_post_ra>
